<compile_context>
chip_gen: v6e
topology: v6e:2x2x1
jax: 0.10.0
libtpu: 0.0.40
codegen_flags: <defaults>
</compile_context>

<pallas_src>
import jax
import jax.numpy as jnp
from jax import lax
from jax.experimental import pallas as pl
from jax.experimental.pallas import tpu as pltpu

# ----- DualPathBlock config: DualPathBlock(in_chs=24, num_1x1_a=32, num_3x3_b=32,
#                                            num_1x1_c=16, increase=8, Groups=4,
#                                            _type='proj', if_selayer=False) -----
IN_CHS_1 = 16          # channels of x[0]
IN_CHS_2 = 8           # channels of x[1]
IN_CHS = IN_CHS_1 + IN_CHS_2            # 24
NUM_1x1_A = 32
NUM_3x3_B = 32
NUM_1x1_C = 16
INCREASE = 8
GROUPS = 4
N, H, W = 2, 8, 8
BN_EPS = 1e-5

COUT_PROJ = NUM_1x1_C + 2 * INCREASE    # 32 (projection path output channels)
COUT_C = NUM_1x1_C + INCREASE           # 24 (c1x1_c output channels)
CIN_G = NUM_1x1_A // GROUPS             # 8
COUT_G = NUM_3x3_B // GROUPS            # 8
ROWS = H * W                            # spatial rows per batch element


def dual_path_block_kernel(x_ref, bn_ref, w_pa_ref, w_b_ref, w_c_ref,
                           summ_ref, dense_ref):
    """Whole batch in one grid step; everything stays in registers."""
    b_blk = x_ref.shape[0]
    m = b_blk * ROWS

    # input already channel-duplicated in the wrapper: (b, H, W, 2*IN_CHS)
    x2 = x_ref[...].reshape(m, 2 * IN_CHS)                   # (128, 48) f32

    bn = bn_ref[...]                                         # (4, 48) f32
    s_wa = bn[0:1, :]                                        # (1, 48)
    b_wa = bn[1:2, :]                                        # (1, 48)
    sb_b = bn[2:3, :NUM_1x1_A]                               # (1, 32)
    sc_b = bn[3:4, :NUM_3x3_B]                               # (1, 32)

    # ---- fused c1x1_w (projection) + c1x1_a: BN -> ReLU -> 1x1 conv --------
    # block-diagonal weight (48, 64); sb_s is pre-folded into the c1x1_a cols.
    pa_act = jnp.maximum(x2 * s_wa + b_wa, 0.0)
    pa = jnp.dot(pa_act.astype(jnp.bfloat16), w_pa_ref[...],
                 preferred_element_type=jnp.float32)         # (128, 64) f32
    data_o = pa[:, :COUT_PROJ]                               # (128, 32)
    xa = pa[:, COUT_PROJ:]                                   # (128, 32), already * sb_s

    # ---- c3x3_b: (BN scale folded) -> bias -> ReLU -> grouped 3x3 conv -----
    xb_act = jnp.maximum(xa + sb_b, 0.0)
    xb3 = xb_act.reshape(b_blk * H, W, NUM_1x1_A)            # W -> sublanes

    # W shifts hoisted out of the tap loop (2 rolls + 2 masks total).
    w_idx = lax.broadcasted_iota(jnp.int32, (1, W, 1), 1)

    def shift_w(t, dw):                                      # t'[w] = t[w+dw], zero pad
        rolled = pltpu.roll(t, shift=(-dw) % W, axis=1)      # sublane rotate (XLU)
        valid = (w_idx + dw >= 0) & (w_idx + dw < W)
        return jnp.where(valid, rolled, 0.0)

    # dx = 0, 1, 2  <->  dw = -1, 0, +1 ; cast to bf16 once (3 casts, not 9).
    xw = [shift_w(xb3, -1), xb3, shift_w(xb3, +1)]
    xw = [t.reshape(b_blk, H, W, NUM_1x1_A).astype(jnp.bfloat16) for t in xw]

    zrow = jnp.zeros((b_blk, 1, W, NUM_1x1_A), jnp.bfloat16)

    def shift_h(t, dh):                                      # per batch element along H
        if dh == 0:
            return t
        if dh > 0:
            return jnp.concatenate([t[:, dh:], zrow], axis=1)
        return jnp.concatenate([zrow, t[:, :dh]], axis=1)

    acc = jnp.zeros((m, NUM_3x3_B), jnp.float32)
    for dy in range(3):
        for dx in range(3):
            tap = dy * 3 + dx
            shifted = shift_h(xw[dx], dy - 1)
            acc = acc + jnp.dot(
                shifted.reshape(m, NUM_1x1_A),
                w_b_ref[tap],                                # (32, 32) block-diag, * sc_s
                preferred_element_type=jnp.float32)

    # ---- c1x1_c: (BN scale folded) -> bias -> ReLU -> 1x1 conv -------------
    c_act = jnp.maximum(acc + sc_b, 0.0)
    out_c = jnp.dot(c_act.astype(jnp.bfloat16), w_c_ref[...],
                    preferred_element_type=jnp.float32)      # (128, 24) f32

    # ---- residual sum + dense concat -> two outputs -------------------------
    summ = data_o[:, :NUM_1x1_C] + out_c[:, :NUM_1x1_C]
    dense = jnp.concatenate([data_o[:, NUM_1x1_C:], out_c[:, NUM_1x1_C:]],
                            axis=-1)                          # (128, 24)
    summ_ref[...] = summ.reshape(b_blk, H, W, NUM_1x1_C)
    dense_ref[...] = dense.reshape(b_blk, H, W, 3 * INCREASE)


def dual_path_block(data_in, kp):
    """data_in: (N, H, W, IN_CHS) f32 NHWC -> (summ, dense) in NHWC."""
    n = data_in.shape[0]
    b_blk = n                                # one grid step for the whole batch

    # channel duplication done once here (not per grid step in the kernel)
    data_dup = jnp.concatenate([data_in, data_in], axis=-1)   # (N, H, W, 48)

    def const_spec(shape):
        return pl.BlockSpec(shape, lambda b, _s=shape: (0,) * len(_s))

    in_specs = [
        pl.BlockSpec((b_blk, H, W, 2 * IN_CHS), lambda b: (b, 0, 0, 0)),
        const_spec(kp["bn"].shape),
        const_spec(kp["w_pa"].shape),
        const_spec(kp["w_b"].shape),
        const_spec(kp["w_c"].shape),
    ]
    out_shape = (
        jax.ShapeDtypeStruct((n, H, W, NUM_1x1_C), jnp.float32),
        jax.ShapeDtypeStruct((n, H, W, 3 * INCREASE), jnp.float32),
    )
    out_specs = (
        pl.BlockSpec((b_blk, H, W, NUM_1x1_C), lambda b: (b, 0, 0, 0)),
        pl.BlockSpec((b_blk, H, W, 3 * INCREASE), lambda b: (b, 0, 0, 0)),
    )
    summ, dense = pl.pallas_call(
        dual_path_block_kernel,
        out_shape=out_shape,
        grid=(n // b_blk,),
        in_specs=in_specs,
        out_specs=out_specs,
        compiler_params=pltpu.CompilerParams(
            dimension_semantics=("arbitrary",)),
    )(data_dup, kp["bn"], kp["w_pa"], kp["w_b"], kp["w_c"])
    return summ, dense


def make_params(key):
    """Module parameters in (folded) f32 form, used by both kernel and reference."""
    ks = jax.random.split(key, 8)

    def bn_fold(k, c):
        kg, kb, km, kv = jax.random.split(k, 4)
        gamma = jax.random.uniform(kg, (c,), jnp.float32, 0.5, 1.5)
        beta = 0.1 * jax.random.normal(kb, (c,), jnp.float32)
        mean = 0.1 * jax.random.normal(km, (c,), jnp.float32)
        var = jax.random.uniform(kv, (c,), jnp.float32, 0.5, 1.5)
        scale = gamma * lax.rsqrt(var + BN_EPS)
        bias = beta - mean * scale
        return scale, bias

    sw_s, sw_b = bn_fold(ks[0], IN_CHS)
    sa_s, sa_b = bn_fold(ks[1], IN_CHS)
    sb_s, sb_b = bn_fold(ks[2], NUM_1x1_A)
    sc_s, sc_b = bn_fold(ks[3], NUM_3x3_B)

    # 1x1 conv weights as (Cin, Cout) matrices (== torch (Cout,Cin,1,1) transposed)
    w_proj = 0.1 * jax.random.normal(ks[4], (IN_CHS, COUT_PROJ), jnp.float32)
    w_a = 0.1 * jax.random.normal(ks[5], (IN_CHS, NUM_1x1_A), jnp.float32)
    # grouped 3x3 conv weight in PyTorch layout (Cout, Cin/groups, 3, 3)
    w_b_torch = 0.1 * jax.random.normal(ks[6], (NUM_3x3_B, CIN_G, 3, 3), jnp.float32)
    w_c = 0.1 * jax.random.normal(ks[7], (NUM_3x3_B, COUT_C), jnp.float32)

    return dict(sw_s=sw_s, sw_b=sw_b, sa_s=sa_s, sa_b=sa_b,
                sb_s=sb_s, sb_b=sb_b, sc_s=sc_s, sc_b=sc_b,
                w_proj=w_proj, w_a=w_a, w_b_torch=w_b_torch, w_c=w_c)


def pack_kernel_params(p):
    """Relayout parameters into the kernel's fused layout (done once, in JAX)."""
    # one packed operand for all small per-channel vectors:
    #   row0 = [sw_s | sa_s], row1 = [sw_b | sa_b], row2 = sb_b (padded), row3 = sc_b
    bn = jnp.zeros((4, 2 * IN_CHS), jnp.float32)
    bn = bn.at[0].set(jnp.concatenate([p["sw_s"], p["sa_s"]]))
    bn = bn.at[1].set(jnp.concatenate([p["sw_b"], p["sa_b"]]))
    bn = bn.at[2, :NUM_1x1_A].set(p["sb_b"])
    bn = bn.at[3, :NUM_3x3_B].set(p["sc_b"])

    # fused block-diagonal weight for (proj | c1x1_a); sb_s folded into c1x1_a cols
    w_pa = jnp.zeros((2 * IN_CHS, COUT_PROJ + NUM_1x1_A), jnp.float32)
    w_pa = w_pa.at[:IN_CHS, :COUT_PROJ].set(p["w_proj"])
    w_pa = w_pa.at[IN_CHS:, COUT_PROJ:].set(p["w_a"] * p["sb_s"][None, :])

    # per-tap block-diagonal grouped-conv weights: (9 taps, 32, 32); sc_s folded
    w_b_g = p["w_b_torch"].reshape(GROUPS, COUT_G, CIN_G, 3, 3)
    w_small = jnp.transpose(w_b_g, (3, 4, 0, 2, 1)).reshape(9, GROUPS, CIN_G, COUT_G)
    w_taps = jnp.zeros((9, NUM_1x1_A, NUM_3x3_B), jnp.float32)
    for g in range(GROUPS):
        w_taps = w_taps.at[:, g * CIN_G:(g + 1) * CIN_G,
                           g * COUT_G:(g + 1) * COUT_G].set(w_small[:, g])
    w_taps = w_taps * p["sc_s"][None, None, :]

    bf = jnp.bfloat16
    return dict(bn=bn, w_pa=w_pa.astype(bf), w_b=w_taps.astype(bf),
                w_c=p["w_c"].astype(bf))


def ref_forward(data_in, p):
    """Pure-JAX f32 reference (NHWC)."""
    def bn_relu(t, s, b):
        return jnp.maximum(t * s.reshape(1, 1, 1, -1) + b.reshape(1, 1, 1, -1), 0.0)

    def conv1x1(t, wmat):
        return jnp.einsum("nhwc,cd->nhwd", t, wmat)

    data_o = conv1x1(bn_relu(data_in, p["sw_s"], p["sw_b"]), p["w_proj"])
    xa = conv1x1(bn_relu(data_in, p["sa_s"], p["sa_b"]), p["w_a"])
    xb_in = bn_relu(xa, p["sb_s"], p["sb_b"])
    w_b_hwio = jnp.transpose(p["w_b_torch"], (2, 3, 1, 0))   # (3, 3, cin_g, Cout)
    xb = lax.conv_general_dilated(
        xb_in, w_b_hwio, window_strides=(1, 1), padding="SAME",
        dimension_numbers=("NHWC", "HWIO", "NHWC"),
        feature_group_count=GROUPS)
    out = conv1x1(bn_relu(xb, p["sc_s"], p["sc_b"]), p["w_c"])
    summ = data_o[..., :NUM_1x1_C] + out[..., :NUM_1x1_C]
    dense = jnp.concatenate([data_o[..., NUM_1x1_C:], out[..., NUM_1x1_C:]], axis=-1)
    return summ, dense


if __name__ == "__main__":
    key = jax.random.PRNGKey(0)
    k_x1, k_x2, k_p = jax.random.split(key, 3)

    # PyTorch-style inputs: x = [x1, x2], NCHW
    x1_nchw = jax.random.normal(k_x1, (N, IN_CHS_1, H, W), jnp.float32)
    x2_nchw = jax.random.normal(k_x2, (N, IN_CHS_2, H, W), jnp.float32)
    params = make_params(k_p)
    kparams = pack_kernel_params(params)

    # glue: NCHW -> NHWC and data_in = torch.cat(x, dim=1)
    x1 = jnp.transpose(x1_nchw, (0, 2, 3, 1))
    x2 = jnp.transpose(x2_nchw, (0, 2, 3, 1))
    data_in = jnp.concatenate([x1, x2], axis=-1)

    summ, dense = dual_path_block(data_in, kparams)
    summ = jax.block_until_ready(summ)
    dense = jax.block_until_ready(dense)

    # correctness check against the pure-JAX f32 reference (tolerance covers bf16 MXU)
    ref_summ, ref_dense = ref_forward(data_in, params)
    assert summ.shape == (N, H, W, NUM_1x1_C)
    assert dense.shape == (N, H, W, 3 * INCREASE)
    assert jnp.allclose(summ, ref_summ, atol=5e-2, rtol=5e-2)
    assert jnp.allclose(dense, ref_dense, atol=5e-2, rtol=5e-2)

    # glue: module returns [summ, dense] in NCHW
    summ_nchw = jnp.transpose(summ, (0, 3, 1, 2))
    dense_nchw = jnp.transpose(dense, (0, 3, 1, 2))
    jax.block_until_ready((summ_nchw, dense_nchw))

    print("KERNEL_OK")
</pallas_src>

<mosaic_0001>
module attributes {stable_mosaic.version = 11 : i64} {
  func.func @dual_path_block_kernel(%arg0: i32, %arg1: memref<2x8x8x48xf32, #tpu.memory_space<vmem>>, %arg2: memref<4x48xf32, #tpu.memory_space<vmem>>, %arg3: memref<48x64xbf16, #tpu.memory_space<vmem>>, %arg4: memref<9x32x32xbf16, #tpu.memory_space<vmem>>, %arg5: memref<32x24xbf16, #tpu.memory_space<vmem>>, %arg6: memref<2x8x8x16xf32, #tpu.memory_space<vmem>>, %arg7: memref<2x8x8x24xf32, #tpu.memory_space<vmem>>) attributes {dimension_semantics = [#tpu.dimension_semantics<arbitrary>], iteration_bounds = array<i64: 1>, scalar_prefetch = 0 : i64, scratch_operands = 0 : i64, tpu.core_type = #tpu.core_type<tc>, window_params = [{transform_indices = @transform_0, window_bounds = array<i64: 2, 8, 8, 48>}, {pipeline_mode = #tpu.pipeline_mode<synchronous>, transform_indices = @transform_1, window_bounds = array<i64: 4, 48>}, {pipeline_mode = #tpu.pipeline_mode<synchronous>, transform_indices = @transform_2, window_bounds = array<i64: 48, 64>}, {pipeline_mode = #tpu.pipeline_mode<synchronous>, transform_indices = @transform_3, window_bounds = array<i64: 9, 32, 32>}, {pipeline_mode = #tpu.pipeline_mode<synchronous>, transform_indices = @transform_4, window_bounds = array<i64: 32, 24>}, {transform_indices = @transform_5, window_bounds = array<i64: 2, 8, 8, 16>}, {transform_indices = @transform_6, window_bounds = array<i64: 2, 8, 8, 24>}]} {
    %c0 = arith.constant 0 : index
    %c0_0 = arith.constant 0 : index
    %c0_1 = arith.constant 0 : index
    %c0_2 = arith.constant 0 : index
    %0 = vector.load %arg1[%c0, %c0_0, %c0_1, %c0_2] : memref<2x8x8x48xf32, #tpu.memory_space<vmem>>, vector<2x8x8x48xf32>
    %1 = vector.shape_cast %0 : vector<2x8x8x48xf32> to vector<128x48xf32>
    %c0_3 = arith.constant 0 : index
    %c0_4 = arith.constant 0 : index
    %2 = vector.load %arg2[%c0_3, %c0_4] : memref<4x48xf32, #tpu.memory_space<vmem>>, vector<4x48xf32>
    %3 = vector.extract_strided_slice %2 {offsets = [0, 0], sizes = [1, 48], strides = [1, 1]} : vector<4x48xf32> to vector<1x48xf32>
    %4 = vector.extract_strided_slice %2 {offsets = [1, 0], sizes = [1, 48], strides = [1, 1]} : vector<4x48xf32> to vector<1x48xf32>
    %5 = vector.extract_strided_slice %2 {offsets = [2, 0], sizes = [1, 32], strides = [1, 1]} : vector<4x48xf32> to vector<1x32xf32>
    %6 = vector.extract_strided_slice %2 {offsets = [3, 0], sizes = [1, 32], strides = [1, 1]} : vector<4x48xf32> to vector<1x32xf32>
    %7 = vector.broadcast %3 : vector<1x48xf32> to vector<128x48xf32>
    %8 = arith.mulf %1, %7 : vector<128x48xf32>
    %9 = vector.broadcast %4 : vector<1x48xf32> to vector<128x48xf32>
    %10 = arith.addf %8, %9 : vector<128x48xf32>
    %cst = arith.constant 0.000000e+00 : f32
    %11 = vector.broadcast %cst : f32 to vector<128x48xf32>
    %12 = arith.maximumf %10, %11 : vector<128x48xf32>
    %13 = arith.truncf %12 : vector<128x48xf32> to vector<128x48xbf16>
    %c0_5 = arith.constant 0 : index
    %c0_6 = arith.constant 0 : index
    %14 = vector.load %arg3[%c0_5, %c0_6] : memref<48x64xbf16, #tpu.memory_space<vmem>>, vector<48x64xbf16>
    %cst_7 = arith.constant dense<0.000000e+00> : vector<128x64xf32>
    %15 = tpu.matmul %13, %14, %cst_7 {dimension_numbers = #tpu.dot_dimension_numbers<[1], [0], [0], [1], [0, 0, 1, 1], [], []>} : vector<128x48xbf16>, vector<48x64xbf16>, vector<128x64xf32> -> vector<128x64xf32>
    %16 = vector.extract_strided_slice %15 {offsets = [0, 0], sizes = [128, 32], strides = [1, 1]} : vector<128x64xf32> to vector<128x32xf32>
    %17 = vector.extract_strided_slice %15 {offsets = [0, 32], sizes = [128, 32], strides = [1, 1]} : vector<128x64xf32> to vector<128x32xf32>
    %18 = vector.broadcast %5 : vector<1x32xf32> to vector<128x32xf32>
    %19 = arith.addf %17, %18 : vector<128x32xf32>
    %cst_8 = arith.constant 0.000000e+00 : f32
    %20 = vector.broadcast %cst_8 : f32 to vector<128x32xf32>
    %21 = arith.maximumf %19, %20 : vector<128x32xf32>
    %22 = vector.shape_cast %21 : vector<128x32xf32> to vector<16x8x32xf32>
    %23 = tpu.iota {dimensions = array<i32: 1>} : vector<1x8x1xi32>
    %c1_i32 = arith.constant 1 : i32
    %24 = tpu.dynamic_rotate %22 by %c1_i32 dim 1 : vector<16x8x32xf32>, i32 -> vector<16x8x32xf32>
    %c-1_i32 = arith.constant -1 : i32
    %25 = vector.broadcast %c-1_i32 : i32 to vector<1x8x1xi32>
    %26 = arith.addi %23, %25 : vector<1x8x1xi32>
    %c0_i32 = arith.constant 0 : i32
    %27 = vector.broadcast %c0_i32 : i32 to vector<1x8x1xi32>
    %28 = arith.cmpi sge, %26, %27 : vector<1x8x1xi32>
    %c-1_i32_9 = arith.constant -1 : i32
    %29 = vector.broadcast %c-1_i32_9 : i32 to vector<1x8x1xi32>
    %30 = arith.addi %23, %29 : vector<1x8x1xi32>
    %c8_i32 = arith.constant 8 : i32
    %31 = vector.broadcast %c8_i32 : i32 to vector<1x8x1xi32>
    %32 = arith.cmpi slt, %30, %31 : vector<1x8x1xi32>
    %33 = arith.andi %28, %32 : vector<1x8x1xi1>
    %cst_10 = arith.constant 0.000000e+00 : f32
    %34 = vector.shape_cast %33 : vector<1x8x1xi1> to vector<1x8x1xi1>
    %35 = vector.broadcast %34 : vector<1x8x1xi1> to vector<16x8x32xi1>
    %36 = vector.broadcast %cst_10 : f32 to vector<16x8x32xf32>
    %37 = arith.select %35, %24, %36 : vector<16x8x32xi1>, vector<16x8x32xf32>
    %c7_i32 = arith.constant 7 : i32
    %38 = tpu.dynamic_rotate %22 by %c7_i32 dim 1 : vector<16x8x32xf32>, i32 -> vector<16x8x32xf32>
    %c1_i32_11 = arith.constant 1 : i32
    %39 = vector.broadcast %c1_i32_11 : i32 to vector<1x8x1xi32>
    %40 = arith.addi %23, %39 : vector<1x8x1xi32>
    %c0_i32_12 = arith.constant 0 : i32
    %41 = vector.broadcast %c0_i32_12 : i32 to vector<1x8x1xi32>
    %42 = arith.cmpi sge, %40, %41 : vector<1x8x1xi32>
    %c1_i32_13 = arith.constant 1 : i32
    %43 = vector.broadcast %c1_i32_13 : i32 to vector<1x8x1xi32>
    %44 = arith.addi %23, %43 : vector<1x8x1xi32>
    %c8_i32_14 = arith.constant 8 : i32
    %45 = vector.broadcast %c8_i32_14 : i32 to vector<1x8x1xi32>
    %46 = arith.cmpi slt, %44, %45 : vector<1x8x1xi32>
    %47 = arith.andi %42, %46 : vector<1x8x1xi1>
    %cst_15 = arith.constant 0.000000e+00 : f32
    %48 = vector.shape_cast %47 : vector<1x8x1xi1> to vector<1x8x1xi1>
    %49 = vector.broadcast %48 : vector<1x8x1xi1> to vector<16x8x32xi1>
    %50 = vector.broadcast %cst_15 : f32 to vector<16x8x32xf32>
    %51 = arith.select %49, %38, %50 : vector<16x8x32xi1>, vector<16x8x32xf32>
    %52 = vector.shape_cast %37 : vector<16x8x32xf32> to vector<2x8x8x32xf32>
    %53 = arith.truncf %52 : vector<2x8x8x32xf32> to vector<2x8x8x32xbf16>
    %54 = vector.shape_cast %22 : vector<16x8x32xf32> to vector<2x8x8x32xf32>
    %55 = arith.truncf %54 : vector<2x8x8x32xf32> to vector<2x8x8x32xbf16>
    %56 = vector.shape_cast %51 : vector<16x8x32xf32> to vector<2x8x8x32xf32>
    %57 = arith.truncf %56 : vector<2x8x8x32xf32> to vector<2x8x8x32xbf16>
    %cst_16 = arith.constant 0.000000e+00 : bf16
    %58 = vector.broadcast %cst_16 : bf16 to vector<2x1x8x32xbf16>
    %cst_17 = arith.constant 0.000000e+00 : f32
    %59 = vector.broadcast %cst_17 : f32 to vector<128x32xf32>
    %60 = vector.extract_strided_slice %53 {offsets = [0, 0, 0, 0], sizes = [2, 7, 8, 32], strides = [1, 1, 1, 1]} : vector<2x8x8x32xbf16> to vector<2x7x8x32xbf16>
    %61 = tpu.concatenate %58, %60 in 1 : vector<2x1x8x32xbf16>, vector<2x7x8x32xbf16> -> vector<2x8x8x32xbf16>
    %62 = vector.shape_cast %61 : vector<2x8x8x32xbf16> to vector<128x32xbf16>
    %c0_18 = arith.constant 0 : index
    %c0_19 = arith.constant 0 : index
    %c0_20 = arith.constant 0 : index
    %63 = vector.load %arg4[%c0_18, %c0_19, %c0_20] : memref<9x32x32xbf16, #tpu.memory_space<vmem>>, vector<1x32x32xbf16>
    %64 = vector.shape_cast %63 : vector<1x32x32xbf16> to vector<32x32xbf16>
    %cst_21 = arith.constant dense<0.000000e+00> : vector<128x32xf32>
    %65 = tpu.matmul %62, %64, %cst_21 {dimension_numbers = #tpu.dot_dimension_numbers<[1], [0], [0], [1], [0, 0, 1, 1], [], []>} : vector<128x32xbf16>, vector<32x32xbf16>, vector<128x32xf32> -> vector<128x32xf32>
    %66 = arith.addf %59, %65 : vector<128x32xf32>
    %67 = vector.extract_strided_slice %55 {offsets = [0, 0, 0, 0], sizes = [2, 7, 8, 32], strides = [1, 1, 1, 1]} : vector<2x8x8x32xbf16> to vector<2x7x8x32xbf16>
    %68 = tpu.concatenate %58, %67 in 1 : vector<2x1x8x32xbf16>, vector<2x7x8x32xbf16> -> vector<2x8x8x32xbf16>
    %69 = vector.shape_cast %68 : vector<2x8x8x32xbf16> to vector<128x32xbf16>
    %c1 = arith.constant 1 : index
    %c0_22 = arith.constant 0 : index
    %c0_23 = arith.constant 0 : index
    %70 = vector.load %arg4[%c1, %c0_22, %c0_23] : memref<9x32x32xbf16, #tpu.memory_space<vmem>>, vector<1x32x32xbf16>
    %71 = vector.shape_cast %70 : vector<1x32x32xbf16> to vector<32x32xbf16>
    %cst_24 = arith.constant dense<0.000000e+00> : vector<128x32xf32>
    %72 = tpu.matmul %69, %71, %cst_24 {dimension_numbers = #tpu.dot_dimension_numbers<[1], [0], [0], [1], [0, 0, 1, 1], [], []>} : vector<128x32xbf16>, vector<32x32xbf16>, vector<128x32xf32> -> vector<128x32xf32>
    %73 = arith.addf %66, %72 : vector<128x32xf32>
    %74 = vector.extract_strided_slice %57 {offsets = [0, 0, 0, 0], sizes = [2, 7, 8, 32], strides = [1, 1, 1, 1]} : vector<2x8x8x32xbf16> to vector<2x7x8x32xbf16>
    %75 = tpu.concatenate %58, %74 in 1 : vector<2x1x8x32xbf16>, vector<2x7x8x32xbf16> -> vector<2x8x8x32xbf16>
    %76 = vector.shape_cast %75 : vector<2x8x8x32xbf16> to vector<128x32xbf16>
    %c2 = arith.constant 2 : index
    %c0_25 = arith.constant 0 : index
    %c0_26 = arith.constant 0 : index
    %77 = vector.load %arg4[%c2, %c0_25, %c0_26] : memref<9x32x32xbf16, #tpu.memory_space<vmem>>, vector<1x32x32xbf16>
    %78 = vector.shape_cast %77 : vector<1x32x32xbf16> to vector<32x32xbf16>
    %cst_27 = arith.constant dense<0.000000e+00> : vector<128x32xf32>
    %79 = tpu.matmul %76, %78, %cst_27 {dimension_numbers = #tpu.dot_dimension_numbers<[1], [0], [0], [1], [0, 0, 1, 1], [], []>} : vector<128x32xbf16>, vector<32x32xbf16>, vector<128x32xf32> -> vector<128x32xf32>
    %80 = arith.addf %73, %79 : vector<128x32xf32>
    %81 = vector.shape_cast %53 : vector<2x8x8x32xbf16> to vector<128x32xbf16>
    %c3 = arith.constant 3 : index
    %c0_28 = arith.constant 0 : index
    %c0_29 = arith.constant 0 : index
    %82 = vector.load %arg4[%c3, %c0_28, %c0_29] : memref<9x32x32xbf16, #tpu.memory_space<vmem>>, vector<1x32x32xbf16>
    %83 = vector.shape_cast %82 : vector<1x32x32xbf16> to vector<32x32xbf16>
    %cst_30 = arith.constant dense<0.000000e+00> : vector<128x32xf32>
    %84 = tpu.matmul %81, %83, %cst_30 {dimension_numbers = #tpu.dot_dimension_numbers<[1], [0], [0], [1], [0, 0, 1, 1], [], []>} : vector<128x32xbf16>, vector<32x32xbf16>, vector<128x32xf32> -> vector<128x32xf32>
    %85 = arith.addf %80, %84 : vector<128x32xf32>
    %86 = vector.shape_cast %55 : vector<2x8x8x32xbf16> to vector<128x32xbf16>
    %c4 = arith.constant 4 : index
    %c0_31 = arith.constant 0 : index
    %c0_32 = arith.constant 0 : index
    %87 = vector.load %arg4[%c4, %c0_31, %c0_32] : memref<9x32x32xbf16, #tpu.memory_space<vmem>>, vector<1x32x32xbf16>
    %88 = vector.shape_cast %87 : vector<1x32x32xbf16> to vector<32x32xbf16>
    %cst_33 = arith.constant dense<0.000000e+00> : vector<128x32xf32>
    %89 = tpu.matmul %86, %88, %cst_33 {dimension_numbers = #tpu.dot_dimension_numbers<[1], [0], [0], [1], [0, 0, 1, 1], [], []>} : vector<128x32xbf16>, vector<32x32xbf16>, vector<128x32xf32> -> vector<128x32xf32>
    %90 = arith.addf %85, %89 : vector<128x32xf32>
    %91 = vector.shape_cast %57 : vector<2x8x8x32xbf16> to vector<128x32xbf16>
    %c5 = arith.constant 5 : index
    %c0_34 = arith.constant 0 : index
    %c0_35 = arith.constant 0 : index
    %92 = vector.load %arg4[%c5, %c0_34, %c0_35] : memref<9x32x32xbf16, #tpu.memory_space<vmem>>, vector<1x32x32xbf16>
    %93 = vector.shape_cast %92 : vector<1x32x32xbf16> to vector<32x32xbf16>
    %cst_36 = arith.constant dense<0.000000e+00> : vector<128x32xf32>
    %94 = tpu.matmul %91, %93, %cst_36 {dimension_numbers = #tpu.dot_dimension_numbers<[1], [0], [0], [1], [0, 0, 1, 1], [], []>} : vector<128x32xbf16>, vector<32x32xbf16>, vector<128x32xf32> -> vector<128x32xf32>
    %95 = arith.addf %90, %94 : vector<128x32xf32>
    %96 = vector.extract_strided_slice %53 {offsets = [0, 1, 0, 0], sizes = [2, 7, 8, 32], strides = [1, 1, 1, 1]} : vector<2x8x8x32xbf16> to vector<2x7x8x32xbf16>
    %97 = tpu.concatenate %96, %58 in 1 : vector<2x7x8x32xbf16>, vector<2x1x8x32xbf16> -> vector<2x8x8x32xbf16>
    %98 = vector.shape_cast %97 : vector<2x8x8x32xbf16> to vector<128x32xbf16>
    %c6 = arith.constant 6 : index
    %c0_37 = arith.constant 0 : index
    %c0_38 = arith.constant 0 : index
    %99 = vector.load %arg4[%c6, %c0_37, %c0_38] : memref<9x32x32xbf16, #tpu.memory_space<vmem>>, vector<1x32x32xbf16>
    %100 = vector.shape_cast %99 : vector<1x32x32xbf16> to vector<32x32xbf16>
    %cst_39 = arith.constant dense<0.000000e+00> : vector<128x32xf32>
    %101 = tpu.matmul %98, %100, %cst_39 {dimension_numbers = #tpu.dot_dimension_numbers<[1], [0], [0], [1], [0, 0, 1, 1], [], []>} : vector<128x32xbf16>, vector<32x32xbf16>, vector<128x32xf32> -> vector<128x32xf32>
    %102 = arith.addf %95, %101 : vector<128x32xf32>
    %103 = vector.extract_strided_slice %55 {offsets = [0, 1, 0, 0], sizes = [2, 7, 8, 32], strides = [1, 1, 1, 1]} : vector<2x8x8x32xbf16> to vector<2x7x8x32xbf16>
    %104 = tpu.concatenate %103, %58 in 1 : vector<2x7x8x32xbf16>, vector<2x1x8x32xbf16> -> vector<2x8x8x32xbf16>
    %105 = vector.shape_cast %104 : vector<2x8x8x32xbf16> to vector<128x32xbf16>
    %c7 = arith.constant 7 : index
    %c0_40 = arith.constant 0 : index
    %c0_41 = arith.constant 0 : index
    %106 = vector.load %arg4[%c7, %c0_40, %c0_41] : memref<9x32x32xbf16, #tpu.memory_space<vmem>>, vector<1x32x32xbf16>
    %107 = vector.shape_cast %106 : vector<1x32x32xbf16> to vector<32x32xbf16>
    %cst_42 = arith.constant dense<0.000000e+00> : vector<128x32xf32>
    %108 = tpu.matmul %105, %107, %cst_42 {dimension_numbers = #tpu.dot_dimension_numbers<[1], [0], [0], [1], [0, 0, 1, 1], [], []>} : vector<128x32xbf16>, vector<32x32xbf16>, vector<128x32xf32> -> vector<128x32xf32>
    %109 = arith.addf %102, %108 : vector<128x32xf32>
    %110 = vector.extract_strided_slice %57 {offsets = [0, 1, 0, 0], sizes = [2, 7, 8, 32], strides = [1, 1, 1, 1]} : vector<2x8x8x32xbf16> to vector<2x7x8x32xbf16>
    %111 = tpu.concatenate %110, %58 in 1 : vector<2x7x8x32xbf16>, vector<2x1x8x32xbf16> -> vector<2x8x8x32xbf16>
    %112 = vector.shape_cast %111 : vector<2x8x8x32xbf16> to vector<128x32xbf16>
    %c8 = arith.constant 8 : index
    %c0_43 = arith.constant 0 : index
    %c0_44 = arith.constant 0 : index
    %113 = vector.load %arg4[%c8, %c0_43, %c0_44] : memref<9x32x32xbf16, #tpu.memory_space<vmem>>, vector<1x32x32xbf16>
    %114 = vector.shape_cast %113 : vector<1x32x32xbf16> to vector<32x32xbf16>
    %cst_45 = arith.constant dense<0.000000e+00> : vector<128x32xf32>
    %115 = tpu.matmul %112, %114, %cst_45 {dimension_numbers = #tpu.dot_dimension_numbers<[1], [0], [0], [1], [0, 0, 1, 1], [], []>} : vector<128x32xbf16>, vector<32x32xbf16>, vector<128x32xf32> -> vector<128x32xf32>
    %116 = arith.addf %109, %115 : vector<128x32xf32>
    %117 = vector.broadcast %6 : vector<1x32xf32> to vector<128x32xf32>
    %118 = arith.addf %116, %117 : vector<128x32xf32>
    %cst_46 = arith.constant 0.000000e+00 : f32
    %119 = vector.broadcast %cst_46 : f32 to vector<128x32xf32>
    %120 = arith.maximumf %118, %119 : vector<128x32xf32>
    %121 = arith.truncf %120 : vector<128x32xf32> to vector<128x32xbf16>
    %c0_47 = arith.constant 0 : index
    %c0_48 = arith.constant 0 : index
    %122 = vector.load %arg5[%c0_47, %c0_48] : memref<32x24xbf16, #tpu.memory_space<vmem>>, vector<32x24xbf16>
    %cst_49 = arith.constant dense<0.000000e+00> : vector<128x24xf32>
    %123 = tpu.matmul %121, %122, %cst_49 {dimension_numbers = #tpu.dot_dimension_numbers<[1], [0], [0], [1], [0, 0, 1, 1], [], []>} : vector<128x32xbf16>, vector<32x24xbf16>, vector<128x24xf32> -> vector<128x24xf32>
    %124 = vector.extract_strided_slice %16 {offsets = [0, 0], sizes = [128, 16], strides = [1, 1]} : vector<128x32xf32> to vector<128x16xf32>
    %125 = vector.extract_strided_slice %123 {offsets = [0, 0], sizes = [128, 16], strides = [1, 1]} : vector<128x24xf32> to vector<128x16xf32>
    %126 = arith.addf %124, %125 : vector<128x16xf32>
    %127 = vector.extract_strided_slice %16 {offsets = [0, 16], sizes = [128, 16], strides = [1, 1]} : vector<128x32xf32> to vector<128x16xf32>
    %128 = vector.extract_strided_slice %123 {offsets = [0, 16], sizes = [128, 8], strides = [1, 1]} : vector<128x24xf32> to vector<128x8xf32>
    %129 = tpu.concatenate %127, %128 in 1 : vector<128x16xf32>, vector<128x8xf32> -> vector<128x24xf32>
    %130 = vector.shape_cast %126 : vector<128x16xf32> to vector<2x8x8x16xf32>
    %c0_50 = arith.constant 0 : index
    %c0_51 = arith.constant 0 : index
    %c0_52 = arith.constant 0 : index
    %c0_53 = arith.constant 0 : index
    %131 = vector.load %arg6[%c0_50, %c0_51, %c0_52, %c0_53] : memref<2x8x8x16xf32, #tpu.memory_space<vmem>>, vector<2x8x8x16xf32>
    tpu.vector_store %arg6[%c0_50, %c0_51, %c0_52, %c0_53], %130 {strides = array<i32>} : memref<2x8x8x16xf32, #tpu.memory_space<vmem>>, vector<2x8x8x16xf32>,
    %132 = vector.shape_cast %129 : vector<128x24xf32> to vector<2x8x8x24xf32>
    %c0_54 = arith.constant 0 : index
    %c0_55 = arith.constant 0 : index
    %c0_56 = arith.constant 0 : index
    %c0_57 = arith.constant 0 : index
    %133 = vector.load %arg7[%c0_54, %c0_55, %c0_56, %c0_57] : memref<2x8x8x24xf32, #tpu.memory_space<vmem>>, vector<2x8x8x24xf32>
    tpu.vector_store %arg7[%c0_54, %c0_55, %c0_56, %c0_57], %132 {strides = array<i32>} : memref<2x8x8x24xf32, #tpu.memory_space<vmem>>, vector<2x8x8x24xf32>,
    return
  }
  func.func @transform_0(%arg0: i32) -> (i32, i32, i32, i32) {
    %c0_i32 = arith.constant 0 : i32
    %c0_i32_0 = arith.constant 0 : i32
    %c0_i32_1 = arith.constant 0 : i32
    %c0_i32_2 = arith.constant 0 : i32
    return %arg0, %c0_i32, %c0_i32_0, %c0_i32_1 : i32, i32, i32, i32
  }
  func.func @transform_1(%arg0: i32) -> (i32, i32) {
    %c0_i32 = arith.constant 0 : i32
    %c0_i32_0 = arith.constant 0 : i32
    %c0_i32_1 = arith.constant 0 : i32
    return %c0_i32, %c0_i32_0 : i32, i32
  }
  func.func @transform_2(%arg0: i32) -> (i32, i32) {
    %c0_i32 = arith.constant 0 : i32
    %c0_i32_0 = arith.constant 0 : i32
    %c0_i32_1 = arith.constant 0 : i32
    return %c0_i32, %c0_i32_0 : i32, i32
  }
  func.func @transform_3(%arg0: i32) -> (i32, i32, i32) {
    %c0_i32 = arith.constant 0 : i32
    %c0_i32_0 = arith.constant 0 : i32
    %c0_i32_1 = arith.constant 0 : i32
    %c0_i32_2 = arith.constant 0 : i32
    return %c0_i32, %c0_i32_0, %c0_i32_1 : i32, i32, i32
  }
  func.func @transform_4(%arg0: i32) -> (i32, i32) {
    %c0_i32 = arith.constant 0 : i32
    %c0_i32_0 = arith.constant 0 : i32
    %c0_i32_1 = arith.constant 0 : i32
    return %c0_i32, %c0_i32_0 : i32, i32
  }
  func.func @transform_5(%arg0: i32) -> (i32, i32, i32, i32) {
    %c0_i32 = arith.constant 0 : i32
    %c0_i32_0 = arith.constant 0 : i32
    %c0_i32_1 = arith.constant 0 : i32
    %c0_i32_2 = arith.constant 0 : i32
    return %arg0, %c0_i32, %c0_i32_0, %c0_i32_1 : i32, i32, i32, i32
  }
  func.func @transform_6(%arg0: i32) -> (i32, i32, i32, i32) {
    %c0_i32 = arith.constant 0 : i32
    %c0_i32_0 = arith.constant 0 : i32
    %c0_i32_1 = arith.constant 0 : i32
    %c0_i32_2 = arith.constant 0 : i32
    return %arg0, %c0_i32, %c0_i32_0, %c0_i32_1 : i32, i32, i32, i32
  }
}

</mosaic_0001>

<bundles_post_ra>
// kernel: tpu_custom_call.1
= control target key start
LH: loop header
LB: loop body
LE: loop exit
PB: predicated region body
PF: predicated region fallthrough
CT: control target
= control target key end

     0   :  { %12 = vsyncpa [#allocation3], 0  ;;  %s4057_s0 = inlined_call_operand.hbm [shape: f32[2,8,8,48], index: 0, kind: input, shape index: {}]   ;;  %s4058_s1 = inlined_call_operand.vmem [shape: f32[4,48], index: 1, kind: input, shape index: {}]   ;;  %s4059_s2 = inlined_call_operand.vmem [shape: bf16[48,64], index: 2, kind: input, shape index: {}]   ;;  %s4060_s3 = inlined_call_operand.hbm [shape: bf16[9,32,32], index: 3, kind: input, shape index: {}]   ;;  %s4061_s4 = inlined_call_operand.vmem [shape: bf16[32,24], index: 4, kind: input, shape index: {}]   ;;  %s4062_s5 = inlined_call_operand.hbm [shape: f32[2,8,8,16], index: 5, kind: output, shape index: {0}]   ;;  %s4063_s6 = inlined_call_operand.hbm [shape: f32[2,8,8,24], index: 6, kind: output, shape index: {1}]  }
   0x1   :  { %13 = vsyncpa [#allocation6], 0 }
   0x2   :  { %14 = vsyncpa [#allocation4], 0 }
   0x3   :  { %15 = vsyncpa [#allocation9], 0  ;;  %s3109_s21 = smov [#allocation2]  }
   0x4   :  { %s21_s22 = sshll.u32 %s3109_s21, 4  ;;  %s22_s22 = int_to_ptr.vmem [resolvable:$true] %s21_s22 }
   0x5   :  { %s3029_s23 = scalar_lea.vmem %s22_s22, 2048  ;;  %p3034_p1 = scmp.lt.s32.totalorder %s22_s22, %s22_s22 }
   0x6   :  { %p3030_p0 = scmp.ne.s32.totalorder %s22_s22, %s3029_s23  ;;  %p3035_p2 = scmp.lt.s32.totalorder %s3029_s23, %s3029_s23 }
   0x8   :  { %p3036_p3 = por %p3035_p2, %p3034_p1 }
   0xa   :  { %p3037_p4 = pnand %p3036_p3, %p3030_p0 }
   0xc   :  { %3040 = shalt.err (!%p3037_p4)
}
   0xd   :  { %s3110_s24 = smov 128   ;;  %s3111_s25 = smov 8  }
   0xe   :  { %27 = dma.hbm_to_vmem [thread:$0]  %s4057_s0, 2048, %s22_s22, [#allocation3], %s3110_s24, %s3110_s24, %s3111_s25  }
   0xf   :  { %s3112_s28 = smov [#allocation5]  }
  0x10   :  { %s37_s29 = sshll.u32 %s3112_s28, 4  ;;  %s38_s29 = int_to_ptr.vmem [resolvable:$true] %s37_s29 }
  0x11   :  { %s3049_s30 = scalar_lea.vmem %s38_s29, 2304  ;;  %p3054_p6 = scmp.lt.s32.totalorder %s38_s29, %s38_s29 }
  0x12   :  { %p3050_p5 = scmp.ne.s32.totalorder %s38_s29, %s3049_s30  ;;  %p3055_p7 = scmp.lt.s32.totalorder %s3049_s30, %s3049_s30 }
  0x14   :  { %p3056_p8 = por %p3055_p7, %p3054_p6 }
  0x16   :  { %p3057_p9 = pnand %p3056_p8, %p3050_p5 }
  0x18   :  { %3060 = shalt.err (!%p3057_p9)
}
  0x19   :  { %s3113_s7 = smov 64   ;;  %s3114_s8 = smov 4  }
  0x1a   :  { %43 = dma.hbm_to_vmem [thread:$0]  %s4060_s3, 2304, %s38_s29, [#allocation6], %s3113_s7, %s3113_s7, %s3114_s8  }
  0x1b   :  { %3101 = dma.done.wait [#allocation3], 2048  }
  0x1c   :  { %3102 = vsyncadd [#allocation3], 4294965248 }
  0x1d   :  { %3103 = dma.done.wait [#allocation6], 2304  }
  0x1e   :  { %3104 = vsyncadd [#allocation6], 4294964992  ;;  %v70_v0 = vlaneseq  ;;  %v2997_v4 = vld [vmem:[%s4059_s2 + $0x10] sm:$0xff]   ;;  %v2998_v6 = vld [vmem:[%s4059_s2 + $0x8] sm:$0xff]   ;;  %vm158_vm0 = vcmask 392192   ;;  %s3116_s17 = smov 96  }
  0x1f   :  { %2729 = vmatprep.subr.bf16.mxu0 %v2997_v4  ;;  %v2999_v7 = vld [vmem:[%s4059_s2] sm:$0xff]   ;;  %v54_v9 = vld [vmem:[#allocation2 + $0x8] sm:$0xff]  ;;  %v55_v13 = vld [vmem:[#allocation2 + $0x10] sm:$0xff]  ;;  %s3115_s2 = smov 32   ;;  %s3118_s18 = smov 112   ;;  %vm597_vm1 = vcmask 261120  }
  0x20   :  { %v3165_v1 = vshrl.u32 %v70_v0, 7  ;;  %2730 = vmatpush3.bf16.msra.mxu0 %v2997_v4  ;;  %v53_v8 = vld [vmem:[#allocation2] sm:$0xff]  ;;  %v56_v14 = vld [vmem:[#allocation2 + $0x18] sm:$0xff]  ;;  %v58_v17 = vld [vmem:[#allocation2 + $0x28] sm:$0xff]  ;;  %vm2321_vm4 = vcmask 130048   ;;  %vm2354_vm5 = vcmask 195584  }
  0x21   :  { %v69_v10 = vld [vmem:[%s4058_s1] sm:$0xf]  ;;  %2731 = vmatprep.subr.bf16.mxu0 %v2998_v6  ;;  %v59_v18 = vld [vmem:[#allocation2 + $0x30] sm:$0xff]  ;;  %v60_v19 = vld [vmem:[#allocation2 + $0x38] sm:$0xff]  ;;  %s3120_s27 = smov [#allocation7]  }
  0x22   :  { %v72_v2 = vsub.s32 0, %v3165_v1  ;;  %v92_v3 = vsub.s32 1, %v3165_v1  ;;  %v282_v5 = vsub.s32 2, %v3165_v1  ;;  %v57_v15 = vld [vmem:[#allocation2 + $0x20] sm:$0xff]  ;;  %v62_v29 = vld [vmem:[#allocation2 + $0x48] sm:$0xff]  ;;  %v63_v34 = vld [vmem:[#allocation2 + $0x50] sm:$0xff] }
  0x23   :  { %v61_v28 = vld [vmem:[#allocation2 + $0x40] sm:$0xff]  ;;  %v64_v35 = vld [vmem:[#allocation2 + $0x58] sm:$0xff]  ;;  %v66_v49 = vld [vmem:[#allocation2 + $0x68] sm:$0xff]  ;;  %s2376_s28 = sshll.u32 %s3120_s27, 4  ;;  %s2377_s28 = int_to_ptr.vmem [resolvable:$true] %s2376_s28 }
  0x24   :  { %v3182_v11 = vrot.slane %v69_v10, %v72_v2  ;;  %v3184_v12 = vrot.slane %v69_v10, %v92_v3  ;;  %v283_v16 = vrot.slane %v69_v10, %v282_v5  ;;  %2732 = vmatpush3.bf16.msra.mxu0 %v2998_v6  ;;  %v65_v48 = vld [vmem:[#allocation2 + $0x60] sm:$0xff]  ;;  %v67_v2 = vld [vmem:[#allocation2 + $0x70] sm:$0xff]  ;;  %v68_v3 = vld [vmem:[#allocation2 + $0x78] sm:$0xff] }
  0x25   :  { %2733 = vmatprep.subr.bf16.mxu0 %v2999_v7 }
  0x26   :  { %v74_v20 = vmul.f32 %v3182_v11, %v53_v8  ;;  %v75_v21 = vmul.f32 %v3182_v11, %v54_v9  ;;  %v76_v22 = vmul.f32 %v3182_v11, %v55_v13  ;;  %v77_v23 = vmul.f32 %v3182_v11, %v56_v14  ;;  %285 = vrot.lane.b32.xlu0 %v283_v16, %s3115_s2 }
  0x27   :  { %v78_v24 = vmul.f32 %v3182_v11, %v57_v15  ;;  %v79_v25 = vmul.f32 %v3182_v11, %v58_v17  ;;  %v80_v26 = vmul.f32 %v3182_v11, %v59_v18  ;;  %v81_v27 = vmul.f32 %v3182_v11, %v60_v19 }
  0x28   :  { %v94_v30 = vadd.f32 %v3184_v12, %v74_v20  ;;  %v95_v31 = vadd.f32 %v3184_v12, %v75_v21  ;;  %v96_v32 = vadd.f32 %v3184_v12, %v76_v22  ;;  %v97_v33 = vadd.f32 %v3184_v12, %v77_v23  ;;  %2734 = vmatpush3.bf16.msra.mxu0 %v2999_v7 }
  0x29   :  { %v98_v36 = vadd.f32 %v3184_v12, %v78_v24  ;;  %v99_v37 = vadd.f32 %v3184_v12, %v79_v25  ;;  %v100_v38 = vadd.f32 %v3184_v12, %v80_v26  ;;  %v101_v39 = vadd.f32 %v3184_v12, %v81_v27  ;;  %v3001_v26 = vld [vmem:[#allocation5 + $0x10] sm:$0xff]  }
  0x2a   :  { %v110_v40 = vmax.f32 %v94_v30, 0.0  ;;  %v111_v41 = vmax.f32 %v95_v31, 0.0  ;;  %v112_v42 = vmax.f32 %v96_v32, 0.0  ;;  %v113_v43 = vmax.f32 %v97_v33, 0.0 }
  0x2b   :  { %v114_v44 = vmax.f32 %v98_v36, 0.0  ;;  %v115_v45 = vmax.f32 %v99_v37, 0.0  ;;  %v116_v46 = vmax.f32 %v100_v38, 0.0  ;;  %v117_v47 = vmax.f32 %v101_v39, 0.0  ;;  %v3259_v39 = vld [vmem:[#allocation5 + $0x8] sm:$0xff]  }
  0x2c   :  { %v126_v50 = vpack.c.bf16 %v111_v41, %v110_v40  ;;  %v127_v51 = vpack.c.bf16 %v113_v43, %v112_v42  ;;  %v82_v52 = vmul.f32 %v3182_v11, %v61_v28  ;;  %v83_v53 = vmul.f32 %v3182_v11, %v62_v29 }
  0x2d   :  { %v128_v54 = vpack.c.bf16 %v115_v45, %v114_v44  ;;  %v84_v55 = vmul.f32 %v3182_v11, %v63_v34  ;;  %v85_v56 = vmul.f32 %v3182_v11, %v64_v35  ;;  %v86_v63 = vmul.f32 %v3182_v11, %v65_v48 }
  0x2e   :  { %2735 = vmatprep.mubr.msk.bf16.mxu0 %vm158_vm0, %v126_v50  ;;  %v102_v57 = vadd.f32 %v3184_v12, %v82_v52  ;;  %v103_v58 = vadd.f32 %v3184_v12, %v83_v53  ;;  %v87_v0 = vmul.f32 %v3182_v11, %v66_v49  ;;  %v129_v4 = vpack.c.bf16 %v117_v47, %v116_v46 }
  0x2f   :  { %2736 = vmatmul.mubr.msk.bf16.vlgmr.msra.gmra.mxu0 %vm158_vm0, %v127_v51  ;;  %v104_v59 = vadd.f32 %v3184_v12, %v84_v55  ;;  %v105_v60 = vadd.f32 %v3184_v12, %v85_v56  ;;  %v106_v8 = vadd.f32 %v3184_v12, %v86_v63  ;;  %v88_v10 = vmul.f32 %v3182_v11, %v67_v2 }
  0x30   :  { %2739 = vmatprep.mubr.msk.bf16.mxu0 %vm158_vm0, %v128_v54  ;;  %v118_v61 = vmax.f32 %v102_v57, 0.0  ;;  %v119_v62 = vmax.f32 %v103_v58, 0.0  ;;  %v107_v9 = vadd.f32 %v3184_v12, %v87_v0  ;;  %v89_v13 = vmul.f32 %v3182_v11, %v68_v3  ;;  %v3000_v11 = vld [vmem:[#allocation5 + $0x18] sm:$0xff]  }
  0x31   :  { %v120_v5 = vmax.f32 %v104_v59, 0.0  ;;  %v121_v6 = vmax.f32 %v105_v60, 0.0  ;;  %v122_v14 = vmax.f32 %v106_v8, 0.0  ;;  %v108_v17 = vadd.f32 %v3184_v12, %v88_v10  ;;  %2751 = vmatprep.subr.bf16.mxu0 %v3000_v11  ;;  %2951 = vmatprep.subr.bf16.mxu1 %v3000_v11 }
  0x32   :  { %v130_v7 = vpack.c.bf16 %v119_v62, %v118_v61  ;;  %v123_v15 = vmax.f32 %v107_v9, 0.0  ;;  %v109_v18 = vadd.f32 %v3184_v12, %v89_v13  ;;  %2752 = vmatpush3.bf16.msra.mxu0 %v3000_v11  ;;  %2953 = vmatpush3.bf16.msra.mxu1 %v3000_v11 }
  0x33   :  { %v131_v16 = vpack.c.bf16 %v121_v6, %v120_v5  ;;  %v124_v20 = vmax.f32 %v108_v17, 0.0  ;;  %2952 = vmatprep.subr.bf16.mxu1 %v3001_v26  ;;  %2753 = vmatprep.subr.bf16.mxu0 %v3001_v26 }
  0x34   :  { %v132_v19 = vpack.c.bf16 %v123_v15, %v122_v14  ;;  %v125_v21 = vmax.f32 %v109_v18, 0.0  ;;  %v3338_v15 = vld [vmem:[#allocation5 + $0x28] sm:$0xff]  }
  0x36   :  { %v133_v22 = vpack.c.bf16 %v125_v21, %v124_v20  ;;  %2954 = vmatpush3.bf16.msra.mxu1 %v3001_v26  ;;  %2754 = vmatpush3.bf16.msra.mxu0 %v3001_v26 }
  0x37   :  { %2740 = vmatmul.mubr.msk.bf16.gmra.mxu0 %vm158_vm0, %v129_v4  ;;  %2771 = vmatprep.subr.bf16.mxu1 %v3259_v39 }
  0x38   :  { %2743 = vmatprep.mubr.msk.bf16.mxu0 %vm158_vm0, %v130_v7  ;;  %2791 = vmatprep.subr.bf16.mxu0 %v3338_v15 }
  0x3f   :  { %2744 = vmatmul.mubr.msk.bf16.gmra.mxu0 %vm158_vm0, %v131_v16 }
  0x40   :  { %2747 = vmatprep.mubr.msk.bf16.mxu0 %vm158_vm0, %v132_v19 }
  0x47   :  { %2748 = vmatmul.mubr.msk.bf16.gmra.mxu0 %vm158_vm0, %v133_v22 }
  0x98   :  { %v3230_v12 = vpop.permute.xlu0 %285 }
  0xef   :  { %v3226_v23 = vpop.f32.mrf.mxu0 }
  0xf0   :  { %4082 = vst [vmem:[#allocation14_spill] sm:$0xff] %v3226_v23  ;;  %v290_v18 = vadd.f32 %v3226_v23, %v3230_v12 }
  0xf1   :  { %v3228_v24 = vpop.f32.mrf.mxu0 }
  0xf2   :  { %4083 = vst [vmem:[#allocation15_spill] sm:$0xff] %v3228_v24  ;;  %v288_v61 = vadd.f32 %v3230_v12, %v3228_v24  ;;  %v306_v22 = vmax.f32 %v290_v18, 0.0 }
  0xf3   :  { %v3232_v25 = vpop.f32.mrf.mxu0 }
  0xf4   :  { %4084 = vst [vmem:[#allocation16_spill] sm:$0xff] %v3232_v25  ;;  %v291_v27 = vadd.f32 %v3232_v25, %v3230_v12  ;;  %v304_v6 = vmax.f32 %v288_v61, 0.0 }
  0xf5   :  { %v3236_v28 = vpop.f32.mrf.mxu0 }
  0xf6   :  { %4085 = vst [vmem:[#allocation17_spill] sm:$0xff] %v3236_v28  ;;  %v3238_v29 = vmax.f32 %v291_v27, 0.0  ;;  %v289_v54 = vadd.f32 %v3230_v12, %v3236_v28  ;;  %v478_v17 = vpack.c.bf16 %v304_v6, %v304_v6  ;;  %v480_v27 = vpack.c.bf16 %v306_v22, %v306_v22 }
  0xf7   :  { %v3240_v30 = vpop.f32.mrf.mxu0 }
  0xf8   :  { %4086 = vst [vmem:[#allocation18_spill] sm:$0xff] %v3240_v30  ;;  %v294_v31 = vadd.f32 %v3240_v30, %v3230_v12  ;;  %v481_v32 = vpack.c.bf16 %v3238_v29, %v3238_v29  ;;  %v3316_v2 = vmax.f32 %v289_v54, 0.0 }
  0xf9   :  { %v3246_v33 = vpop.f32.mrf.mxu0 }
  0xfa   :  { %4087 = vst [vmem:[#allocation19_spill] sm:$0xff] %v3246_v33  ;;  %v3248_v34 = vmax.f32 %v294_v31, 0.0  ;;  %v292_v35 = vadd.f32 %v3230_v12, %v3246_v33  ;;  %534 = vrot.lane.b32.xlu0 %v481_v32, %s3116_s17  ;;  %v2967_v14 = vpack.i.bf16 %v3316_v2, %v304_v6  ;;  %v479_v26 = vpack.c.bf16 %v3316_v2, %v3316_v2 }
  0xfb   :  { %v3253_v36 = vpop.f32.mrf.mxu0 }
  0xfc   :  { %4088 = vst [vmem:[#allocation20_spill] sm:$0xff] %v3253_v36  ;;  %v3255_v37 = vmax.f32 %v292_v35, 0.0  ;;  %v484_v38 = vpack.c.bf16 %v3248_v34, %v3248_v34 }
  0xfd   :  { %v3261_v40 = vpop.f32.mrf.mxu0 }
  0xfe   :  { %4089 = vst [vmem:[#allocation21_spill] sm:$0xff] %v3261_v40  ;;  %v293_v41 = vadd.f32 %v3230_v12, %v3261_v40  ;;  %540 = vrot.lane.b32.xlu0 %v484_v38, %s3116_s17  ;;  %v482_v42 = vpack.c.bf16 %v3255_v37, %v3255_v37  ;;  %v2613_v44 = vpack.c.bf16 %v3255_v37, %v3238_v29 }
  0xff   :  { %v3269_v43 = vpop.f32.mrf.mxu0  ;;  %v2972_v31 = vpack.i.bf16 %v3255_v37, %v3238_v29 }
 0x100   :  { %4090 = vst [vmem:[#allocation22_spill] sm:$0xff] %v3269_v43  ;;  %v3273_v45 = vmax.f32 %v293_v41, 0.0  ;;  %v298_v46 = vadd.f32 %v3269_v43, %v3230_v12  ;;  %536 = vrot.lane.b32.xlu1 %v482_v42, %s3116_s17  ;;  %v295_v42 = vadd.f32 %v3253_v36, %v3230_v12 }
 0x101   :  { %v3278_v47 = vpop.f32.mrf.mxu0 }
 0x102   :  { %4091 = vst [vmem:[#allocation23_spill] sm:$0xff] %v3278_v47  ;;  %v3280_v48 = vmax.f32 %v298_v46, 0.0  ;;  %v296_v49 = vadd.f32 %v3230_v12, %v3278_v47  ;;  %v483_v50 = vpack.c.bf16 %v3273_v45, %v3273_v45  ;;  %v2614_v52 = vpack.c.bf16 %v3248_v34, %v3273_v45 }
 0x103   :  { %v3286_v51 = vpop.f32.mrf.mxu0  ;;  %v2977_v32 = vpack.i.bf16 %v3248_v34, %v3273_v45  ;;  %v2596_v46 = vpack.c.bf16 %v3316_v2, %v304_v6  ;;  %v4065_v6 = vmov 0  }
 0x104   :  { %4092 = vst [vmem:[#allocation24_spill] sm:$0xff] %v3286_v51  ;;  %v299_v53 = vadd.f32 %v3286_v51, %v3230_v12  ;;  %538 = vrot.lane.b32.xlu1 %v483_v50, %s3116_s17  ;;  %v3297_v56 = vmax.f32 %v296_v49, 0.0  ;;  %v488_v59 = vpack.c.bf16 %v3280_v48, %v3280_v48  ;;  %v2597_v49 = vpack.c.bf16 %v3238_v29, %v306_v22 }
 0x105   :  { %v3295_v55 = vpop.f32.mrf.mxu0  ;;  %v311_v50 = vmax.f32 %v295_v42, 0.0 }
 0x106   :  { %4093 = vst [vmem:[#allocation25_spill] sm:$0xff] %v3295_v55  ;;  %v3299_v57 = vmax.f32 %v299_v53, 0.0  ;;  %v297_v58 = vadd.f32 %v3230_v12, %v3295_v55  ;;  %v486_v4 = vpack.c.bf16 %v3297_v56, %v3297_v56  ;;  %v2598_v53 = vpack.c.bf16 %v3273_v45, %v3255_v37 }
 0x107   :  { %v3305_v60 = vpop.f32.mrf.mxu0  ;;  %v2599_v54 = vpack.c.bf16 %v311_v50, %v3248_v34 }
 0x108   :  { %4094 = vst [vmem:[#allocation26_spill] sm:$0xff] %v3305_v60  ;;  %v3309_v62 = vmax.f32 %v297_v58, 0.0  ;;  %546 = vrot.lane.b32.xlu1 %v488_v59, %s3116_s17  ;;  %v489_v63 = vpack.c.bf16 %v3299_v57, %v3299_v57  ;;  %v302_v3 = vadd.f32 %v3305_v60, %v3230_v12  ;;  %v2601_v61 = vpack.c.bf16 %v3299_v57, %v3280_v48 }
 0x109   :  { %v3314_v0 = vpop.f32.mrf.mxu0 }
 0x10a   :  { %4095 = vst [vmem:[#allocation27_spill] sm:$0xff] %v3314_v0  ;;  %548 = vrot.lane.b32.xlu0 %v489_v63, %s3116_s17  ;;  %v487_v7 = vpack.c.bf16 %v3309_v62, %v3309_v62  ;;  %v3330_v9 = vmax.f32 %v302_v3, 0.0  ;;  %v300_v10 = vadd.f32 %v3230_v12, %v3314_v0  ;;  %v2982_v35 = vpack.i.bf16 %v3309_v62, %v3297_v56 }
 0x10b   :  { %v3323_v5 = vpop.f32.mrf.mxu0  ;;  %v2600_v59 = vpack.c.bf16 %v3309_v62, %v3297_v56  ;;  %v2612_v56 = vpack.c.bf16 %v306_v22, %v3316_v2  ;;  %v2615_v2 = vpack.c.bf16 %v3280_v48, %v3309_v62  ;;  %v3003_v62 = vld [vmem:[#allocation5] sm:$0xff]  }
 0x10c   :  { %4096 = vst [vmem:[#allocation28_spill] sm:$0xff] %v3323_v5  ;;  %542 = vrot.lane.b32.xlu1 %v486_v4, %s3116_s17  ;;  %v316_v19 = vmax.f32 %v300_v10, 0.0  ;;  %v492_v20 = vpack.c.bf16 %v3330_v9, %v3330_v9  ;;  %v303_v58 = vadd.f32 %v3323_v5, %v3230_v12  ;;  %v485_v4 = vpack.c.bf16 %v311_v50, %v311_v50 }
 0x10d   :  { %v3328_v8 = vpop.f32.mrf.mxu0 }
 0x10e   :  { %4097 = vst [vmem:[#allocation29_spill] sm:$0xff] %v3328_v8  ;;  %v301_v13 = vadd.f32 %v3230_v12, %v3328_v8  ;;  %544 = vrot.lane.b32.xlu0 %v487_v7, %s3116_s17  ;;  %v490_v11 = vpack.c.bf16 %v316_v19, %v316_v19  ;;  %v2987_v38 = vpack.i.bf16 %v316_v19, %v3299_v57  ;;  %v319_v63 = vmax.f32 %v303_v58, 0.0 }
 0x10f   :  { %v2539_v7 = vcombine.low %v485_v4, %v4065_v6  ;;  %v2616_v10 = vpack.c.bf16 %v316_v19, %v3299_v57 }
 0x110   :  { %v3340_v16 = vmax.f32 %v301_v13, 0.0  ;;  %2968 = vrot.lane.b32.xlu1 %v2967_v14, %s3116_s17  ;;  %v2603_v12 = vpack.c.bf16 %v319_v63, %v3330_v9  ;;  %v493_v13 = vpack.c.bf16 %v319_v63, %v319_v63  ;;  %v3441_v14 = vld [vmem:[#allocation5 + $0x38] sm:$0xff]  }
 0x112   :  { %528 = vrot.lane.b32.xlu0 %v478_v17, %s3116_s17  ;;  %v491_v21 = vpack.c.bf16 %v3340_v16, %v3340_v16  ;;  %v2992_v41 = vpack.i.bf16 %v3330_v9, %v3340_v16  ;;  %v2602_v3 = vpack.c.bf16 %v3340_v16, %v316_v19  ;;  %v2617_v29 = vpack.c.bf16 %v3330_v9, %v3340_v16 }
 0x113   :  { %v2543_v34 = vcombine.low %v493_v13, %v4065_v6 }
 0x114   :  { %554 = vrot.lane.b32.xlu1 %v492_v20, %s3116_s17  ;;  %v3446_v20 = vadd.s32 4294967295, %v3165_v1 }
 0x116   :  { %552 = vrot.lane.b32.xlu0 %v491_v21, %s3116_s17  ;;  %vm403_vm2 = vcmp.ge.s32.totalorder %v3446_v20, 0 }
 0x118   :  { %550 = vrot.lane.b32.xlu1 %v490_v11, %s3116_s17 }
 0x11a   :  { %530 = vrot.lane.b32.xlu0 %v479_v26, %s3116_s17 }
 0x11c   :  { %532 = vrot.lane.b32.xlu1 %v480_v27, %s3116_s17 }
 0x11e   :  { %342 = vrot.lane.b32.xlu0 %v306_v22, %s3116_s17  ;;  %v3450_v22 = vadd.s32 1, %v3165_v1 }
 0x120   :  { %2973 = vrot.lane.b32.xlu1 %v2972_v31, %s3116_s17  ;;  %vm442_vm3 = vcmp.lt.s32.totalorder %v3450_v22, 8 }
 0x122   :  { %2978 = vrot.lane.b32.xlu0 %v2977_v32, %s3116_s17 }
 0x124   :  { %2983 = vrot.lane.b32.xlu1 %v2982_v35, %s3116_s17 }
 0x126   :  { %358 = vrot.lane.b32.xlu0 %v3280_v48, %s3116_s17 }
 0x128   :  { %2988 = vrot.lane.b32.xlu1 %v2987_v38, %s3116_s17 }
 0x12a   :  { %2993 = vrot.lane.b32.xlu0 %v2992_v41, %s3116_s17 }
 0x12c   :  { %1275 = vrot.lane.b32.xlu1 %v2596_v46, %s3116_s17 }
 0x12e   :  { %1277 = vrot.lane.b32.xlu0 %v2597_v49, %s3116_s17 }
 0x130   :  { %352 = vrot.lane.b32.xlu1 %v311_v50, %s3116_s17 }
 0x132   :  { %1279 = vrot.lane.b32.xlu0 %v2598_v53, %s3116_s17 }
 0x134   :  { %1281 = vrot.lane.b32.xlu1 %v2599_v54, %s3116_s17 }
 0x136   :  { %1283 = vrot.lane.b32.xlu0 %v2600_v59, %s3116_s17 }
 0x138   :  { %1285 = vrot.lane.b32.xlu1 %v2601_v61, %s3116_s17 }
 0x13a   :  { %368 = vrot.lane.b32.xlu0 %v319_v63, %s3116_s17 }
 0x13c   :  { %1287 = vrot.lane.b32.xlu1 %v2602_v3, %s3116_s17 }
 0x13e   :  { %1289 = vrot.lane.b32.xlu0 %v2603_v12, %s3116_s17 }
 0x140   :  { %1757 = vrot.lane.b32.xlu1 %v2612_v56, %s3116_s17  ;;  %v3005_v56 = vld [vmem:[#allocation5 + $0x20] sm:$0xff]  }
 0x142   :  { %1759 = vrot.lane.b32.xlu0 %v2613_v44, %s3116_s17 }
 0x144   :  { %1761 = vrot.lane.b32.xlu1 %v2614_v52, %s3116_s17 }
 0x146   :  { %1763 = vrot.lane.b32.xlu0 %v2539_v7, %s3116_s17 }
 0x148   :  { %1765 = vrot.lane.b32.xlu1 %v2615_v2, %s3116_s17 }
 0x14a   :  { %1767 = vrot.lane.b32.xlu0 %v2616_v10, %s3116_s17 }
 0x14c   :  { %1769 = vrot.lane.b32.xlu1 %v2617_v29, %s3116_s17 }
 0x14e   :  { %1771 = vrot.lane.b32.xlu0 %v2543_v34, %s3116_s17 }
 0x150   :  { %2273 = vrot.lane.b32.xlu1 %v3228_v24, %s3118_s18 }
 0x152   :  { %2275 = vrot.lane.b32.xlu0 %v3236_v28, %s3118_s18 }
 0x154   :  { %2277 = vrot.lane.b32.xlu1 %v3226_v23, %s3118_s18 }
 0x156   :  { %2279 = vrot.lane.b32.xlu0 %v3232_v25, %s3118_s18 }
 0x158   :  { %2281 = vrot.lane.b32.xlu1 %v3246_v33, %s3118_s18 }
 0x15a   :  { %2283 = vrot.lane.b32.xlu0 %v3261_v40, %s3118_s18 }
 0x15c   :  { %2285 = vrot.lane.b32.xlu1 %v3240_v30, %s3118_s18 }
 0x15e   :  { %2287 = vrot.lane.b32.xlu0 %v3253_v36, %s3118_s18 }
 0x160   :  { %2289 = vrot.lane.b32.xlu1 %v3278_v47, %s3118_s18 }
 0x162   :  { %2291 = vrot.lane.b32.xlu0 %v3295_v55, %s3118_s18  ;;  %v3014_v55 = vld [vmem:[#allocation5 + $0x78] sm:$0xff]  }
 0x164   :  { %2293 = vrot.lane.b32.xlu1 %v3269_v43, %s3118_s18 }
 0x166   :  { %2295 = vrot.lane.b32.xlu0 %v3286_v51, %s3118_s18 }
 0x168   :  { %2297 = vrot.lane.b32.xlu1 %v3314_v0, %s3118_s18 }
 0x16a   :  { %2299 = vrot.lane.b32.xlu0 %v3328_v8, %s3118_s18 }
 0x16c   :  { %2301 = vrot.lane.b32.xlu1 %v3305_v60, %s3118_s18  ;;  %v535_v37 = vpop.permute.xlu0 %534  ;;  %v3013_v60 = vld [vmem:[#allocation5 + $0x60] sm:$0xff]  }
 0x16e   :  { %2303 = vrot.lane.b32.xlu0 %v3323_v5, %s3118_s18 }
 0x170   :  { %v541_v48 = vpop.permute.xlu0 %540 }
 0x172   :  { %v537_v44 = vpop.permute.xlu1 %536 }
 0x173   :  { %v2418_v45 = vcombine.low %v535_v37, %v537_v44 }
 0x175   :  { %2759 = vmatprep.mubr.msk.bf16.mxu1 %vm597_vm1, %v2418_v45 }
 0x176   :  { %v539_v52 = vpop.permute.xlu1 %538 }
 0x177   :  { %v2419_v57 = vcombine.low %v539_v52, %v541_v48  ;;  %v3007_v52 = vld [vmem:[#allocation5 + $0x48] sm:$0xff]  }
 0x179   :  { %2760 = vmatmul.mubr.msk.bf16.vlgmr.msra.gmra.mxu1 %vm597_vm1, %v2419_v57 }
 0x17a   :  { %v547_v9 = vpop.permute.xlu1 %546  ;;  %2772 = vmatpush3.bf16.msra.mxu1 %v3259_v39 }
 0x17b   :  { %2773 = vmatprep.subr.bf16.mxu1 %v3003_v62 }
 0x17c   :  { %v549_v16 = vpop.permute.xlu0 %548 }
 0x17e   :  { %v543_v17 = vpop.permute.xlu1 %542  ;;  %2774 = vmatpush3.bf16.msra.mxu1 %v3003_v62 }
 0x17f   :  { %v2420_v18 = vcombine.low %v4065_v6, %v543_v17  ;;  %2811 = vmatprep.subr.bf16.mxu1 %v3441_v14 }
 0x180   :  { %v545_v19 = vpop.permute.xlu0 %544 }
 0x181   :  { %v2421_v21 = vcombine.low %v545_v19, %v547_v9  ;;  %2763 = vmatprep.mubr.msk.bf16.mxu1 %vm597_vm1, %v2420_v18  ;;  %v3008_v9 = vld [vmem:[#allocation5 + $0x30] sm:$0xff]  }
 0x182   :  { %v2969_v39 = vpop.permute.xlu1 %2968 }
 0x183   :  { %v2970_v11 = vunpack.i.l.bf16 %v2969_v39  ;;  %2764 = vmatmul.mubr.msk.bf16.gmra.mxu1 %vm597_vm1, %v2421_v21  ;;  %v2971_v49 = vunpack.i.h.bf16 %v2969_v39 }
 0x184   :  { %v529_v26 = vpop.permute.xlu0 %528 }
 0x185   :  { %v386_v27 = vrot.slane %v2970_v11, 7  ;;  %v424_v31 = vrot.slane %v2970_v11, 1  ;;  %v2416_v32 = vcombine.low %v4065_v6, %v529_v26  ;;  %v387_v63 = vrot.slane %v2971_v49, 7 }
 0x186   :  { %v555_v35 = vpop.permute.xlu1 %554  ;;  %v425_v4 = vrot.slane %v2971_v49, 1  ;;  %v3009_v49 = vld [vmem:[#allocation5 + $0x40] sm:$0xff]  }
 0x187   :  { %v3458_v38 = vsel %vm403_vm2, %v386_v27, 0.0  ;;  %2755 = vmatprep.mubr.msk.bf16.mxu0 %vm597_vm1, %v2416_v32  ;;  %v3463_v42 = vsel %vm442_vm3, %v424_v31, 0.0  ;;  %v3477_v29 = vsel %vm403_vm2, %v387_v63, 0.0 }
 0x188   :  { %v553_v41 = vpop.permute.xlu0 %552  ;;  %v462_v46 = vpack.c.bf16 %v3458_v38, %v3458_v38  ;;  %v494_v54 = vpack.c.bf16 %v3463_v42, %v3463_v42  ;;  %v3491_v57 = vsel %vm442_vm3, %v425_v4, 0.0  ;;  %v3544_v4 = vld [vmem:[#allocation5 + $0x68] sm:$0xff]   ;;  %v2588_v5 = vpack.c.bf16 %v3477_v29, %v3458_v38  ;;  %v3012_v38 = vld [vmem:[#allocation5 + $0x50] sm:$0xff]  }
 0x189   :  { %v2423_v58 = vcombine.low %v553_v41, %v555_v35 }
 0x18a   :  { %v551_v50 = vpop.permute.xlu1 %550  ;;  %v2434_v61 = vcombine.low %v4065_v6, %v462_v46  ;;  %v2452_v2 = vcombine.low %v4065_v6, %v494_v54 }
 0x18b   :  { %v2422_v53 = vcombine.low %v549_v16, %v551_v50 }
 0x18c   :  { %v531_v59 = vpop.permute.xlu0 %530 }
 0x18d   :  { %2767 = vmatprep.mubr.msk.bf16.mxu1 %vm597_vm1, %v2422_v53 }
 0x18e   :  { %v533_v3 = vpop.permute.xlu1 %532  ;;  %2768 = vmatmul.mubr.msk.bf16.gmra.mxu1 %vm597_vm1, %v2423_v58 }
 0x18f   :  { %v2417_v12 = vcombine.low %v531_v59, %v533_v3  ;;  %2775 = vmatprep.mubr.msk.bf16.mxu1 %vm597_vm1, %v2434_v61 }
 0x190   :  { %v343_v7 = vpop.permute.xlu0 %342 }
 0x191   :  { %v388_v10 = vrot.slane %v343_v7, 7  ;;  %v426_v13 = vrot.slane %v343_v7, 1  ;;  %2756 = vmatmul.mubr.msk.bf16.vlgmr.msra.gmra.mxu0 %vm597_vm1, %v2417_v12 }
 0x192   :  { %2792 = vmatpush3.bf16.msra.mxu0 %v3338_v15  ;;  %v2974_v34 = vpop.permute.xlu1 %2973  ;;  %2795 = vmatprep.mubr.msk.bf16.mxu0 %vm597_vm1, %v2452_v2 }
 0x193   :  { %v3483_v37 = vsel %vm403_vm2, %v388_v10, 0.0  ;;  %v3487_v44 = vsel %vm442_vm3, %v426_v13, 0.0  ;;  %v2976_v45 = vunpack.i.h.bf16 %v2974_v34  ;;  %v2975_v48 = vunpack.i.l.bf16 %v2974_v34  ;;  %2793 = vmatprep.subr.bf16.mxu0 %v3005_v56 }
 0x194   :  { %v3495_v15 = vpack.c.bf16 %v3483_v37, %v3477_v29  ;;  %v2979_v62 = vpop.permute.xlu0 %2978  ;;  %v3499_v21 = vpack.c.bf16 %v3487_v44, %v3491_v57 }
 0x195   :  { %v390_v16 = vrot.slane %v2976_v45, 7  ;;  %v428_v17 = vrot.slane %v2976_v45, 1  ;;  %v389_v18 = vrot.slane %v2975_v48, 7  ;;  %v427_v19 = vrot.slane %v2975_v48, 1 }
 0x196   :  { %v2981_v39 = vunpack.i.h.bf16 %v2979_v62  ;;  %v2980_v11 = vunpack.i.l.bf16 %v2979_v62  ;;  %2794 = vmatpush3.bf16.msra.mxu0 %v3005_v56  ;;  %v2984_v26 = vpop.permute.xlu1 %2983  ;;  %2776 = vmatmul.mubr.msk.bf16.vlgmr.msra.gmra.mxu1 %vm597_vm1, %v3495_v15 }
 0x197   :  { %v3505_v27 = vsel %vm403_vm2, %v390_v16, 0.0  ;;  %v3509_v31 = vsel %vm442_vm3, %v428_v17, 0.0  ;;  %v3513_v32 = vsel %vm403_vm2, %v389_v18, 0.0  ;;  %v3517_v35 = vsel %vm442_vm3, %v427_v19, 0.0  ;;  %2812 = vmatpush3.bf16.msra.mxu1 %v3441_v14  ;;  %2831 = vmatprep.subr.bf16.mxu0 %v3007_v52  ;;  %v3530_v14 = vld [vmem:[#allocation5 + $0x58] sm:$0xff]  }
 0x198   :  { %v3522_v41 = vpack.c.bf16 %v3505_v27, %v3513_v32  ;;  %v3526_v46 = vpack.c.bf16 %v3509_v31, %v3517_v35  ;;  %2813 = vmatprep.subr.bf16.mxu1 %v3008_v9  ;;  %v392_v50 = vrot.slane %v2981_v39, 7  ;;  %v430_v53 = vrot.slane %v2981_v39, 1  ;;  %v359_v59 = vpop.permute.xlu0 %358 }
 0x199   :  { %v391_v54 = vrot.slane %v2980_v11, 7  ;;  %v429_v58 = vrot.slane %v2980_v11, 1  ;;  %2796 = vmatmul.mubr.msk.bf16.vlgmr.msra.gmra.mxu0 %vm597_vm1, %v3499_v21  ;;  %v2986_v61 = vunpack.i.h.bf16 %v2984_v26  ;;  %v2985_v63 = vunpack.i.l.bf16 %v2984_v26 }
 0x19a   :  { %2832 = vmatpush3.bf16.msra.mxu0 %v3007_v52  ;;  %2779 = vmatprep.mubr.msk.bf16.mxu1 %vm597_vm1, %v3522_v41  ;;  %v3536_v3 = vsel %vm403_vm2, %v392_v50, 0.0  ;;  %v2989_v56 = vpop.permute.xlu1 %2988  ;;  %v3548_v7 = vsel %vm442_vm3, %v430_v53, 0.0  ;;  %v396_v48 = vrot.slane %v359_v59, 7  ;;  %v434_v11 = vrot.slane %v359_v59, 1 }
 0x19b   :  { %v3540_v12 = vsel %vm403_vm2, %v391_v54, 0.0  ;;  %2799 = vmatprep.mubr.msk.bf16.mxu0 %vm597_vm1, %v3526_v46  ;;  %2814 = vmatpush3.bf16.msra.mxu1 %v3008_v9  ;;  %v3552_v2 = vsel %vm442_vm3, %v429_v58, 0.0  ;;  %v395_v13 = vrot.slane %v2986_v61, 7  ;;  %v394_v34 = vrot.slane %v2985_v63, 7 }
 0x19c   :  { %v3556_v10 = vpack.c.bf16 %v3536_v3, %v3540_v12  ;;  %2833 = vmatprep.subr.bf16.mxu0 %v3009_v49  ;;  %v432_v45 = vrot.slane %v2985_v63, 1  ;;  %2851 = vmatprep.subr.bf16.mxu1 %v3530_v14  ;;  %v2991_v52 = vunpack.i.h.bf16 %v2989_v56  ;;  %v2990_v62 = vunpack.i.l.bf16 %v2989_v56  ;;  %v2994_v17 = vpop.permute.xlu0 %2993 }
 0x19d   :  { %v3563_v9 = vpack.c.bf16 %v3548_v7, %v3552_v2  ;;  %v3567_v16 = vsel %vm403_vm2, %v394_v34, 0.0  ;;  %v433_v18 = vrot.slane %v2986_v61, 1  ;;  %v3578_v26 = vsel %vm403_vm2, %v395_v13, 0.0 }
 0x19e   :  { %2780 = vmatmul.mubr.msk.bf16.gmra.mxu1 %vm597_vm1, %v3556_v10  ;;  %2834 = vmatpush3.bf16.msra.mxu0 %v3009_v49  ;;  %v3572_v19 = vsel %vm442_vm3, %v432_v45, 0.0  ;;  %v470_v39 = vpack.c.bf16 %v3567_v16, %v3567_v16  ;;  %v3582_v49 = vsel %vm403_vm2, %v396_v48, 0.0  ;;  %v398_v50 = vrot.slane %v2991_v52, 7 }
 0x19f   :  { %2871 = vmatprep.subr.bf16.mxu0 %v3544_v4  ;;  %v436_v53 = vrot.slane %v2991_v52, 1  ;;  %v397_v54 = vrot.slane %v2990_v62, 7  ;;  %v435_v58 = vrot.slane %v2990_v62, 1  ;;  %v2996_v61 = vunpack.i.h.bf16 %v2994_v17 }
 0x1a0   :  { %v2995_v63 = vunpack.i.l.bf16 %v2994_v17  ;;  %v502_v59 = vpack.c.bf16 %v3572_v19, %v3572_v19  ;;  %v3590_v56 = vsel %vm403_vm2, %v398_v50, 0.0  ;;  %v2438_v13 = vcombine.low %v4065_v6, %v470_v39 }
 0x1a1   :  { %2800 = vmatmul.mubr.msk.bf16.gmra.mxu0 %vm597_vm1, %v3563_v9  ;;  %v3595_v34 = vpack.c.bf16 %v3582_v49, %v3578_v26  ;;  %v3599_v45 = vsel %vm403_vm2, %v397_v54, 0.0  ;;  %v3603_v48 = vsel %vm442_vm3, %v433_v18, 0.0  ;;  %v3607_v52 = vsel %vm442_vm3, %v434_v11, 0.0 }
 0x1a2   :  { %v3611_v62 = vpack.c.bf16 %v3590_v56, %v3599_v45  ;;  %v400_v17 = vrot.slane %v2996_v61, 7  ;;  %2783 = vmatprep.mubr.msk.bf16.mxu1 %vm597_vm1, %v2438_v13  ;;  %v3616_v39 = vsel %vm442_vm3, %v436_v53, 0.0  ;;  %v3620_v50 = vsel %vm442_vm3, %v435_v58, 0.0 }
 0x1a3   :  { %v399_v18 = vrot.slane %v2995_v63, 7  ;;  %v2456_v11 = vcombine.low %v4065_v6, %v502_v59  ;;  %v3629_v54 = vpack.c.bf16 %v3607_v52, %v3603_v48  ;;  %v438_v13 = vrot.slane %v2996_v61, 1  ;;  %v1276_v61 = vpop.permute.xlu1 %1275 }
 0x1a4   :  { %v3633_v53 = vpack.c.bf16 %v3616_v39, %v3620_v50  ;;  %v437_v8 = vrot.slane %v2995_v63, 1  ;;  %v422_v59 = vsel %vm403_vm2, %v400_v17, 0.0  ;;  %v1278_v17 = vpop.permute.xlu0 %1277  ;;  %v2590_v29 = vpack.c.bf16 %v3540_v12, %v3505_v27 }
 0x1a5   :  { %v421_v58 = vsel %vm403_vm2, %v399_v18, 0.0  ;;  %2803 = vmatprep.mubr.msk.bf16.mxu0 %vm597_vm1, %v2456_v11  ;;  %v3654_v18 = vsel %vm442_vm3, %v438_v13, 0.0  ;;  %v2605_v20 = vpack.c.bf16 %v3517_v35, %v3487_v44  ;;  %v2609_v35 = vpack.c.bf16 %v3620_v50, %v3607_v52 }
 0x1a6   :  { %2784 = vmatmul.mubr.msk.bf16.gmra.mxu1 %vm597_vm1, %v3595_v34  ;;  %v3644_v6 = vpack.c.bf16 %v422_v59, %v421_v58  ;;  %v3650_v63 = vsel %vm442_vm3, %v437_v8, 0.0  ;;  %v2589_v8 = vpack.c.bf16 %v3513_v32, %v3483_v37  ;;  %v3015_v32 = vld [vmem:[#allocation5 + $0x88] sm:$0xff]  }
 0x1a7   :  { %2787 = vmatprep.mubr.msk.bf16.mxu1 %vm597_vm1, %v3611_v62  ;;  %v3661_v11 = vpack.c.bf16 %v3654_v18, %v3650_v63  ;;  %v353_v0 = vpop.permute.xlu1 %352 }
 0x1a8   :  { %v393_v13 = vrot.slane %v353_v0, 7 }
 0x1a9   :  { %2804 = vmatmul.mubr.msk.bf16.gmra.mxu0 %vm597_vm1, %v3629_v54 }
 0x1aa   :  { %2807 = vmatprep.mubr.msk.bf16.mxu0 %vm597_vm1, %v3633_v53 }
 0x1ab   :  { %v1282_v12 = vpop.permute.xlu1 %1281 }
 0x1ae   :  { %2788 = vmatmul.mubr.msk.bf16.gmra.mxu1 %vm597_vm1, %v3644_v6 }
 0x1af   :  { %2815 = vmatprep.mubr.msk.bf16.mxu1 %vm597_vm1, %v2588_v5  ;;  %v1280_v5 = vpop.permute.xlu0 %1279 }
 0x1b1   :  { %2808 = vmatmul.mubr.msk.bf16.gmra.mxu0 %vm597_vm1, %v3661_v11 }
 0x1b2   :  { %2835 = vmatprep.mubr.msk.bf16.mxu0 %vm597_vm1, %v1276_v61  ;;  %v415_v61 = vsel %vm403_vm2, %v393_v13, 0.0 }
 0x1b3   :  { %v2591_v37 = vpack.c.bf16 %v415_v61, %v3536_v3  ;;  %v1284_v27 = vpop.permute.xlu0 %1283  ;;  %v2593_v3 = vpack.c.bf16 %v3599_v45, %v3582_v49  ;;  %v2604_v49 = vpack.c.bf16 %v3491_v57, %v3463_v42  ;;  %v3016_v45 = vld [vmem:[#allocation5 + $0x70] sm:$0xff]   ;;  %v3017_v42 = vld [vmem:[#allocation5 + $0x80] sm:$0xff]   ;;  %v469_v44 = vpack.c.bf16 %v415_v61, %v415_v61 }
 0x1b6   :  { %2816 = vmatmul.mubr.msk.bf16.vlgmr.msra.gmra.mxu1 %vm597_vm1, %v2589_v8  ;;  %v2594_v8 = vpack.c.bf16 %v421_v58, %v3590_v56  ;;  %v2606_v58 = vpack.c.bf16 %v3552_v2, %v3509_v31 }
 0x1b7   :  { %2819 = vmatprep.mubr.msk.bf16.mxu1 %vm597_vm1, %v2590_v29  ;;  %2852 = vmatpush3.bf16.msra.mxu1 %v3530_v14  ;;  %v2592_v14 = vpack.c.bf16 %v3578_v26, %v3567_v16 }
 0x1b8   :  { %2853 = vmatprep.subr.bf16.mxu1 %v3012_v38 }
 0x1b9   :  { %2836 = vmatmul.mubr.msk.bf16.vlgmr.msra.gmra.mxu0 %vm597_vm1, %v1278_v17  ;;  %v1286_v17 = vpop.permute.xlu1 %1285 }
 0x1ba   :  { %2872 = vmatpush3.bf16.msra.mxu0 %v3544_v4  ;;  %2839 = vmatprep.mubr.msk.bf16.mxu0 %vm597_vm1, %v1280_v5  ;;  %v369_v4 = vpop.permute.xlu0 %368 }
 0x1bb   :  { %2854 = vmatpush3.bf16.msra.mxu1 %v3012_v38  ;;  %2873 = vmatprep.subr.bf16.mxu0 %v3013_v60  ;;  %v401_v16 = vrot.slane %v369_v4, 7 }
 0x1bc   :  { %2891 = vmatprep.subr.bf16.mxu1 %v3014_v55 }
 0x1bd   :  { %v1288_v26 = vpop.permute.xlu1 %1287 }
 0x1be   :  { %2820 = vmatmul.mubr.msk.bf16.gmra.mxu1 %vm597_vm1, %v2591_v37  ;;  %2874 = vmatpush3.bf16.msra.mxu0 %v3013_v60  ;;  %v423_v60 = vsel %vm403_vm2, %v401_v16, 0.0  ;;  %v1290_v56 = vpop.permute.xlu0 %1289 }
 0x1bf   :  { %2823 = vmatprep.mubr.msk.bf16.mxu1 %vm597_vm1, %v2592_v14  ;;  %2911 = vmatprep.subr.bf16.mxu0 %v3015_v32  ;;  %v2595_v38 = vpack.c.bf16 %v423_v60, %v422_v59  ;;  %v431_v59 = vrot.slane %v353_v0, 1 }
 0x1c1   :  { %2840 = vmatmul.mubr.msk.bf16.gmra.mxu0 %vm597_vm1, %v1282_v12  ;;  %v453_v57 = vsel %vm442_vm3, %v431_v59, 0.0 }
 0x1c2   :  { %2843 = vmatprep.mubr.msk.bf16.mxu0 %vm597_vm1, %v1284_v27  ;;  %v2607_v0 = vpack.c.bf16 %v453_v57, %v3548_v7  ;;  %v439_v7 = vrot.slane %v369_v4, 1  ;;  %v1760_v22 = vpop.permute.xlu0 %1759 }
 0x1c4   :  { %v461_v2 = vsel %vm442_vm3, %v439_v7, 0.0 }
 0x1c6   :  { %2824 = vmatmul.mubr.msk.bf16.gmra.mxu1 %vm597_vm1, %v2593_v3 }
 0x1c7   :  { %2827 = vmatprep.mubr.msk.bf16.mxu1 %vm597_vm1, %v2594_v8 }
 0x1c9   :  { %2844 = vmatmul.mubr.msk.bf16.gmra.mxu0 %vm597_vm1, %v1286_v17 }
 0x1ca   :  { %2847 = vmatprep.mubr.msk.bf16.mxu0 %vm597_vm1, %v1288_v26 }
 0x1ce   :  { %2828 = vmatmul.mubr.msk.bf16.gmra.mxu1 %vm597_vm1, %v2595_v38 }
 0x1cf   :  { %2855 = vmatprep.mubr.msk.bf16.mxu1 %vm597_vm1, %v2604_v49 }
 0x1d1   :  { %2848 = vmatmul.mubr.msk.bf16.gmra.mxu0 %vm597_vm1, %v1290_v56 }
 0x1d2   :  { %2875 = vmatprep.mubr.msk.bf16.mxu0 %vm597_vm1, %v3495_v15  ;;  %v4098_v15 = vmov 0  }
 0x1d3   :  { %v2524_v31 = vcombine.low %v469_v44, %v4098_v15 }
 0x1d6   :  { %2856 = vmatmul.mubr.msk.bf16.vlgmr.msra.gmra.mxu1 %vm597_vm1, %v2605_v20 }
 0x1d7   :  { %2859 = vmatprep.mubr.msk.bf16.mxu1 %vm597_vm1, %v2606_v58  ;;  %2892 = vmatpush3.bf16.msra.mxu1 %v3014_v55  ;;  %v2608_v55 = vpack.c.bf16 %v3603_v48, %v3572_v19  ;;  %v2611_v19 = vpack.c.bf16 %v461_v2, %v3654_v18 }
 0x1d8   :  { %2893 = vmatprep.subr.bf16.mxu1 %v3016_v45 }
 0x1d9   :  { %2876 = vmatmul.mubr.msk.bf16.vlgmr.msra.gmra.mxu0 %vm597_vm1, %v3522_v41  ;;  %v2610_v41 = vpack.c.bf16 %v3650_v63, %v3616_v39 }
 0x1da   :  { %2912 = vmatpush3.bf16.msra.mxu0 %v3015_v32  ;;  %2879 = vmatprep.mubr.msk.bf16.mxu0 %vm597_vm1, %v3556_v10  ;;  %v477_v10 = vpack.c.bf16 %v423_v60, %v423_v60 }
 0x1db   :  { %2894 = vmatpush3.bf16.msra.mxu1 %v3016_v45  ;;  %2913 = vmatprep.subr.bf16.mxu0 %v3017_v42 }
 0x1dc   :  { %v2525_v48 = vcombine.low %v477_v10, %v4098_v15 }
 0x1de   :  { %2860 = vmatmul.mubr.msk.bf16.gmra.mxu1 %vm597_vm1, %v2607_v0  ;;  %2914 = vmatpush3.bf16.msra.mxu0 %v3017_v42 }
 0x1df   :  { %2863 = vmatprep.mubr.msk.bf16.mxu1 %vm597_vm1, %v2608_v55 }
 0x1e1   :  { %2880 = vmatmul.mubr.msk.bf16.gmra.mxu0 %vm597_vm1, %v2524_v31 }
 0x1e2   :  { %2883 = vmatprep.mubr.msk.bf16.mxu0 %vm597_vm1, %v3595_v34  ;;  %v1758_v34 = vpop.permute.xlu1 %1757 }
 0x1e6   :  { %2864 = vmatmul.mubr.msk.bf16.gmra.mxu1 %vm597_vm1, %v2609_v35  ;;  %v1762_v52 = vpop.permute.xlu1 %1761 }
 0x1e7   :  { %2867 = vmatprep.mubr.msk.bf16.mxu1 %vm597_vm1, %v2610_v41 }
 0x1e9   :  { %2884 = vmatmul.mubr.msk.bf16.gmra.mxu0 %vm597_vm1, %v3611_v62  ;;  %v1764_v62 = vpop.permute.xlu0 %1763 }
 0x1ea   :  { %2887 = vmatprep.mubr.msk.bf16.mxu0 %vm597_vm1, %v3644_v6  ;;  %v501_v6 = vpack.c.bf16 %v453_v57, %v453_v57  ;;  %v1766_v39 = vpop.permute.xlu1 %1765 }
 0x1ed   :  { %v1768_v50 = vpop.permute.xlu0 %1767 }
 0x1ee   :  { %2868 = vmatmul.mubr.msk.bf16.gmra.mxu1 %vm597_vm1, %v2611_v19  ;;  %v1770_v63 = vpop.permute.xlu1 %1769 }
 0x1ef   :  { %2895 = vmatprep.mubr.msk.bf16.mxu1 %vm597_vm1, %v1758_v34 }
 0x1f1   :  { %2888 = vmatmul.mubr.msk.bf16.gmra.mxu0 %vm597_vm1, %v2525_v48 }
 0x1f2   :  { %2915 = vmatprep.mubr.msk.bf16.mxu0 %vm597_vm1, %v3499_v21  ;;  %v2554_v21 = vcombine.low %v501_v6, %v4098_v15 }
 0x1f6   :  { %2896 = vmatmul.mubr.msk.bf16.vlgmr.msra.gmra.mxu1 %vm597_vm1, %v1760_v22 }
 0x1f7   :  { %2899 = vmatprep.mubr.msk.bf16.mxu1 %vm597_vm1, %v1762_v52 }
 0x1f9   :  { %2916 = vmatmul.mubr.msk.bf16.vlgmr.msra.gmra.mxu0 %vm597_vm1, %v3526_v46  ;;  %v509_v46 = vpack.c.bf16 %v461_v2, %v461_v2 }
 0x1fa   :  { %2919 = vmatprep.mubr.msk.bf16.mxu0 %vm597_vm1, %v3563_v9  ;;  %v1772_v9 = vpop.permute.xlu0 %1771 }
 0x1fb   :  { %v2555_v18 = vcombine.low %v509_v46, %v4098_v15 }
 0x1fe   :  { %2900 = vmatmul.mubr.msk.bf16.gmra.mxu1 %vm597_vm1, %v1764_v62 }
 0x1ff   :  { %2903 = vmatprep.mubr.msk.bf16.mxu1 %vm597_vm1, %v1766_v39 }
 0x201   :  { %2920 = vmatmul.mubr.msk.bf16.gmra.mxu0 %vm597_vm1, %v2554_v21 }
 0x202   :  { %2923 = vmatprep.mubr.msk.bf16.mxu0 %vm597_vm1, %v3629_v54  ;;  %v3018_v54 = vld [vmem:[%s4061_s4 + $0x8] sm:$0xff]  }
 0x203   :  { %2931 = vmatprep.subr.bf16.mxu1 %v3018_v54 }
 0x204   :  { %2932 = vmatpush3.bf16.msra.mxu1 %v3018_v54 }
 0x206   :  { %2904 = vmatmul.mubr.msk.bf16.gmra.mxu1 %vm597_vm1, %v1768_v50 }
 0x207   :  { %2907 = vmatprep.mubr.msk.bf16.mxu1 %vm597_vm1, %v1770_v63 }
 0x209   :  { %2924 = vmatmul.mubr.msk.bf16.gmra.mxu0 %vm597_vm1, %v3633_v53  ;;  %v3019_v53 = vld [vmem:[%s4061_s4] sm:$0xff]  }
 0x20a   :  { %2927 = vmatprep.mubr.msk.bf16.mxu0 %vm597_vm1, %v3661_v11  ;;  %2933 = vmatprep.subr.bf16.mxu1 %v3019_v53 }
 0x20b   :  { %2934 = vmatpush3.bf16.msra.mxu1 %v3019_v53 }
 0x20e   :  { %2908 = vmatmul.mubr.msk.bf16.gmra.mxu1 %vm597_vm1, %v1772_v9 }
 0x211   :  { %2928 = vmatmul.mubr.msk.bf16.gmra.mxu0 %vm597_vm1, %v2555_v18 }
 0x239   :  { %v2761_v29 = vpop.f32.mrf.mxu1 }
 0x23b   :  { %v672_v11 = vpop.f32.mrf.mxu1 }
 0x23d   :  { %v2762_v13 = vpop.f32.mrf.mxu1 }
 0x23f   :  { %v675_v5 = vpop.f32.mrf.mxu1 }
 0x243   :  { %v2765_v61 = vpop.f32.mrf.mxu1 }
 0x245   :  { %v688_v37 = vpop.f32.mrf.mxu1 }
 0x247   :  { %v2766_v27 = vpop.f32.mrf.mxu1 }
 0x249   :  { %v691_v32 = vpop.f32.mrf.mxu1 }
 0x24e   :  { %v2769_v14 = vpop.f32.mrf.mxu1 }
 0x250   :  { %v704_v12 = vpop.f32.mrf.mxu1 }
 0x251   :  { %v2757_v4 = vpop.f32.mrf.mxu0 }
 0x252   :  { %v2770_v3 = vpop.f32.mrf.mxu1 }
 0x253   :  { %v656_v17 = vpop.f32.mrf.mxu0 }
 0x254   :  { %v707_v8 = vpop.f32.mrf.mxu1 }
 0x255   :  { %v2758_v16 = vpop.f32.mrf.mxu0 }
 0x256   :  { %v2777_v60 = vpop.f32.mrf.mxu1 }
 0x257   :  { %v834_v26 = vadd.f32 %v2777_v60, %v2757_v4  ;;  %v659_v38 = vpop.f32.mrf.mxu0 }
 0x258   :  { %v825_v49 = vpop.f32.mrf.mxu1 }
 0x259   :  { %v826_v56 = vadd.f32 %v825_v49, %v656_v17  ;;  %v2797_v20 = vpop.f32.mrf.mxu0 }
 0x25a   :  { %v3768_v45 = vadd.f32 %v2797_v20, %v834_v26  ;;  %v2778_v58 = vpop.f32.mrf.mxu1 }
 0x25b   :  { %v837_v59 = vadd.f32 %v2778_v58, %v2758_v16  ;;  %v999_v42 = vpop.f32.mrf.mxu0 }
 0x25c   :  { %v3770_v57 = vadd.f32 %v999_v42, %v826_v56  ;;  %v828_v44 = vpop.f32.mrf.mxu1 }
 0x25d   :  { %v829_v0 = vadd.f32 %v828_v44, %v659_v38  ;;  %v2798_v55 = vpop.f32.mrf.mxu0 }
 0x25e   :  { %v3772_v15 = vadd.f32 %v2798_v55, %v837_v59  ;;  %v2781_v31 = vpop.f32.mrf.mxu1 }
 0x25f   :  { %v850_v35 = vadd.f32 %v2781_v31, %v2761_v29  ;;  %v1002_v41 = vpop.f32.mrf.mxu0 }
 0x260   :  { %v3774_v7 = vadd.f32 %v1002_v41, %v829_v0  ;;  %v841_v2 = vpop.f32.mrf.mxu1 }
 0x261   :  { %v842_v10 = vadd.f32 %v841_v2, %v672_v11  ;;  %v2801_v19 = vpop.f32.mrf.mxu0 }
 0x262   :  { %v3776_v34 = vadd.f32 %v2801_v19, %v850_v35  ;;  %v2782_v48 = vpop.f32.mrf.mxu1 }
 0x263   :  { %v853_v22 = vadd.f32 %v2782_v48, %v2762_v13  ;;  %v1015_v52 = vpop.f32.mrf.mxu0 }
 0x264   :  { %v3778_v6 = vadd.f32 %v1015_v52, %v842_v10  ;;  %v844_v62 = vpop.f32.mrf.mxu1 }
 0x265   :  { %v845_v39 = vadd.f32 %v844_v62, %v675_v5  ;;  %v2802_v21 = vpop.f32.mrf.mxu0 }
 0x266   :  { %v3780_v50 = vadd.f32 %v2802_v21, %v853_v22  ;;  %v2785_v63 = vpop.f32.mrf.mxu1 }
 0x267   :  { %v866_v46 = vadd.f32 %v2785_v63, %v2765_v61  ;;  %v1018_v9 = vpop.f32.mrf.mxu0 }
 0x268   :  { %v3782_v18 = vadd.f32 %v1018_v9, %v845_v39  ;;  %v857_v54 = vpop.f32.mrf.mxu1 }
 0x269   :  { %v858_v29 = vadd.f32 %v857_v54, %v688_v37  ;;  %v2805_v53 = vpop.f32.mrf.mxu0 }
 0x26a   :  { %v2786_v11 = vpop.f32.mrf.mxu1  ;;  %v3784_v4 = vadd.f32 %v2805_v53, %v866_v46 }
 0x26b   :  { %v869_v13 = vadd.f32 %v2786_v11, %v2766_v27  ;;  %v1031_v17 = vpop.f32.mrf.mxu0 }
 0x26c   :  { %v860_v16 = vpop.f32.mrf.mxu1  ;;  %v3786_v60 = vadd.f32 %v1031_v17, %v858_v29 }
 0x26d   :  { %v861_v5 = vadd.f32 %v860_v16, %v691_v32  ;;  %v2806_v26 = vpop.f32.mrf.mxu0 }
 0x26e   :  { %v2789_v38 = vpop.f32.mrf.mxu1  ;;  %v3788_v49 = vadd.f32 %v2806_v26, %v869_v13 }
 0x26f   :  { %v882_v61 = vadd.f32 %v2789_v38, %v2769_v14  ;;  %v1034_v56 = vpop.f32.mrf.mxu0 }
 0x270   :  { %v873_v20 = vpop.f32.mrf.mxu1  ;;  %v3790_v58 = vadd.f32 %v1034_v56, %v861_v5 }
 0x271   :  { %v874_v37 = vadd.f32 %v873_v20, %v704_v12  ;;  %v2809_v59 = vpop.f32.mrf.mxu0 }
 0x272   :  { %v2790_v42 = vpop.f32.mrf.mxu1  ;;  %v3792_v44 = vadd.f32 %v2809_v59, %v882_v61 }
 0x273   :  { %v885_v27 = vadd.f32 %v2790_v42, %v2770_v3  ;;  %v1047_v0 = vpop.f32.mrf.mxu0 }
 0x274   :  { %v876_v55 = vpop.f32.mrf.mxu1  ;;  %v3794_v31 = vadd.f32 %v1047_v0, %v874_v37 }
 0x275   :  { %v877_v32 = vadd.f32 %v876_v55, %v707_v8  ;;  %v2810_v35 = vpop.f32.mrf.mxu0 }
 0x276   :  { %4099 = vst [vmem:[#allocation30_spill] sm:$0xff] %v3794_v31  ;;  %v2817_v41 = vpop.f32.mrf.mxu1  ;;  %v3796_v2 = vadd.f32 %v2810_v35, %v885_v27 }
 0x277   :  { %v1050_v14 = vpop.f32.mrf.mxu0 }
 0x278   :  { %4100 = vst [vmem:[#allocation31_spill] sm:$0xff] %v3796_v2  ;;  %v1165_v10 = vpop.f32.mrf.mxu1  ;;  %v3798_v19 = vadd.f32 %v1050_v14, %v877_v32 }
 0x279   :  { %v2837_v48 = vpop.f32.mrf.mxu0 }
 0x27a   :  { %4101 = vst [vmem:[#allocation32_spill] sm:$0xff] %v3798_v19  ;;  %v2818_v12 = vpop.f32.mrf.mxu1 }
 0x27b   :  { %v1361_v22 = vpop.f32.mrf.mxu0 }
 0x27c   :  { %v1168_v52 = vpop.f32.mrf.mxu1 }
 0x27d   :  { %v2838_v62 = vpop.f32.mrf.mxu0 }
 0x27e   :  { %v2821_v39 = vpop.f32.mrf.mxu1 }
 0x27f   :  { %v3800_v3 = vpop.f32.mrf.mxu0 }
 0x280   :  { %v3802_v21 = vpop.f32.mrf.mxu1 }
 0x281   :  { %v3804_v63 = vpop.f32.mrf.mxu0 }
 0x282   :  { %v3806_v8 = vpop.f32.mrf.mxu1 }
 0x283   :  { %v3808_v46 = vpop.f32.mrf.mxu0 }
 0x284   :  { %v3810_v9 = vpop.f32.mrf.mxu1 }
 0x285   :  { %v3812_v54 = vpop.f32.mrf.mxu0 }
 0x286   :  { %v3814_v29 = vpop.f32.mrf.mxu1 }
 0x287   :  { %v3816_v53 = vpop.f32.mrf.mxu0 }
 0x288   :  { %v3818_v11 = vpop.f32.mrf.mxu1 }
 0x289   :  { %v3820_v13 = vpop.f32.mrf.mxu0 }
 0x28a   :  { %v3822_v17 = vpop.f32.mrf.mxu1 }
 0x28b   :  { %v3824_v16 = vpop.f32.mrf.mxu0 }
 0x28c   :  { %v3826_v5 = vpop.f32.mrf.mxu1 }
 0x28d   :  { %v3828_v26 = vpop.f32.mrf.mxu0 }
 0x28e   :  { %v3830_v38 = vpop.f32.mrf.mxu1 }
 0x28f   :  { %v3832_v61 = vpop.f32.mrf.mxu0 }
 0x290   :  { %4102 = vst [vmem:[#allocation33_spill] sm:$0xff] %v3832_v61  ;;  %v3834_v56 = vpop.f32.mrf.mxu1  ;;  %v1228_v61 = vadd.f32 %v1165_v10, %v3770_v57  ;;  %v1234_v10 = vadd.f32 %v2821_v39, %v3776_v34 }
 0x291   :  { %4103 = vst [vmem:[#allocation34_spill] sm:$0xff] %v3834_v56  ;;  %v3836_v20 = vpop.f32.mrf.mxu0 }
 0x292   :  { %4104 = vst [vmem:[#allocation35_spill] sm:$0xff] %v3836_v20  ;;  %v3838_v37 = vpop.f32.mrf.mxu1  ;;  %v1430_v39 = vadd.f32 %v3804_v63, %v1234_v10  ;;  %v1233_v63 = vadd.f32 %v3810_v9, %v3782_v18 }
 0x293   :  { %4105 = vst [vmem:[#allocation36_spill] sm:$0xff] %v3838_v37  ;;  %v3840_v59 = vpop.f32.mrf.mxu0  ;;  %v1230_v37 = vadd.f32 %v2817_v41, %v3768_v45  ;;  %v1229_v45 = vadd.f32 %v1168_v52, %v3774_v7  ;;  %v1232_v7 = vadd.f32 %v3802_v21, %v3778_v6  ;;  %v3020_v6 = vld [vmem:[%s4058_s1] sm:$0xf]  ;;  %s3119_s1 = smov [#allocation8]  }
 0x294   :  { %4106 = vst [vmem:[#allocation37_spill] sm:$0xff] %v3840_v59  ;;  %v3842_v42 = vpop.f32.mrf.mxu1  ;;  %s2388_s26 = sshll.u32 %s3119_s1, 4  ;;  %s2389_s26 = int_to_ptr.vmem [resolvable:$true] %s2388_s26 }
 0x295   :  { %4107 = vst [vmem:[#allocation38_spill] sm:$0xff] %v3842_v42  ;;  %v3844_v27 = vpop.f32.mrf.mxu0  ;;  %v1428_v21 = vadd.f32 %v3808_v46, %v1232_v7  ;;  %s3061_s29 = scalar_lea.vmem %s2389_s26, 2048  ;;  %p3066_p11 = scmp.lt.s32.totalorder %s2389_s26, %s2389_s26 }
 0x296   :  { %4108 = vst [vmem:[#allocation39_spill] sm:$0xff] %v3844_v27  ;;  %v2857_v0 = vpop.f32.mrf.mxu1  ;;  %p3062_p10 = scmp.ne.s32.totalorder %s2389_s26, %s3061_s29  ;;  %p3067_p12 = scmp.lt.s32.totalorder %s3061_s29, %s3061_s29 }
 0x297   :  { %v3846_v55 = vpop.f32.mrf.mxu0 }
 0x298   :  { %4109 = vst [vmem:[#allocation40_spill] sm:$0xff] %v3846_v55  ;;  %v1527_v32 = vpop.f32.mrf.mxu1  ;;  %p3068_p13 = por %p3067_p12, %p3066_p11 }
 0x299   :  { %v2877_v35 = vpop.f32.mrf.mxu0 }
 0x29a   :  { %v2858_v14 = vpop.f32.mrf.mxu1  ;;  %p3069_p0 = pnand %p3068_p13, %p3062_p10 }
 0x29b   :  { %v1665_v51 = vpop.f32.mrf.mxu0 }
 0x29c   :  { %v1530_v47 = vpop.f32.mrf.mxu1 }
 0x29d   :  { %v2878_v43 = vpop.f32.mrf.mxu0 }
 0x29e   :  { %v2861_v40 = vpop.f32.mrf.mxu1 }
 0x29f   :  { %v1668_v36 = vpop.f32.mrf.mxu0 }
 0x2a0   :  { %v1543_v33 = vpop.f32.mrf.mxu1 }
 0x2a1   :  { %v3848_v30 = vpop.f32.mrf.mxu0 }
 0x2a2   :  { %v2862_v28 = vpop.f32.mrf.mxu1 }
 0x2a3   :  { %v3850_v25 = vpop.f32.mrf.mxu0 }
 0x2a4   :  { %v3852_v24 = vpop.f32.mrf.mxu1 }
 0x2a5   :  { %v3854_v23 = vpop.f32.mrf.mxu0 }
 0x2a6   :  { %v3856_v27 = vpop.f32.mrf.mxu1 }
 0x2a7   :  { %4110 = vst [vmem:[#allocation41_spill] sm:$0xff] %v3856_v27  ;;  %v3858_v55 = vpop.f32.mrf.mxu0  ;;  %v1426_v27 = vadd.f32 %v2837_v48, %v1230_v37 }
 0x2a8   :  { %4111 = vst [vmem:[#allocation42_spill] sm:$0xff] %v3858_v55  ;;  %v3860_v42 = vpop.f32.mrf.mxu1  ;;  %v1231_v55 = vadd.f32 %v2818_v12, %v3772_v15  ;;  %v2062_v15 = vsub.s32 3, %v3165_v1  ;;  %v1425_v12 = vadd.f32 %v3800_v3, %v1229_v45  ;;  %v1594_v45 = vadd.f32 %v1543_v33, %v1428_v21  ;;  %v4123_v21 = vld [vmem:[#allocation33_spill] sm:$0xff] }
 0x2a9   :  { %4112 = vst [vmem:[#allocation43_spill] sm:$0xff] %v3860_v42  ;;  %v3862_v19 = vpop.f32.mrf.mxu0  ;;  %v1592_v41 = vadd.f32 %v2857_v0, %v1426_v27 }
 0x2aa   :  { %4113 = vst [vmem:[#allocation44_spill] sm:$0xff] %v3862_v19  ;;  %v3864_v59 = vpop.f32.mrf.mxu1  ;;  %v1427_v57 = vadd.f32 %v2838_v62, %v1231_v55  ;;  %v3905_v3 = vrot.slane %v3020_v6, %v2062_v15 }
 0x2ab   :  { %4114 = vst [vmem:[#allocation45_spill] sm:$0xff] %v3864_v59  ;;  %v3867_v2 = vpop.f32.mrf.mxu0  ;;  %v1424_v59 = vadd.f32 %v1361_v22, %v1228_v61  ;;  %v1730_v22 = vadd.f32 %v2877_v35, %v1592_v41  ;;  %v1235_v61 = vadd.f32 %v3806_v8, %v3780_v50  ;;  %v1596_v8 = vadd.f32 %v2861_v40, %v1430_v39 }
 0x2ac   :  { %4115 = vst [vmem:[#allocation46_spill] sm:$0xff] %v3867_v2  ;;  %v3869_v20 = vpop.f32.mrf.mxu1  ;;  %v1593_v52 = vadd.f32 %v2858_v14, %v1427_v57  ;;  %v1239_v40 = vadd.f32 %v3822_v17, %v3788_v49  ;;  %v1237_v49 = vadd.f32 %v3826_v5, %v3790_v58 }
 0x2ad   :  { %4116 = vst [vmem:[#allocation47_spill] sm:$0xff] %v3869_v20  ;;  %v3872_v56 = vpop.f32.mrf.mxu0  ;;  %v1734_v9 = vadd.f32 %v3848_v30, %v1596_v8  ;;  %v4124_v8 = vld [vmem:[#allocation35_spill] sm:$0xff] }
 0x2ae   :  { %4117 = vst [vmem:[#allocation48_spill] sm:$0xff] %v3872_v56  ;;  %v3874_v31 = vpop.f32.mrf.mxu1  ;;  %v1590_v56 = vadd.f32 %v1527_v32, %v1424_v59  ;;  %v1591_v59 = vadd.f32 %v1530_v47, %v1425_v12  ;;  %v1731_v50 = vadd.f32 %v2878_v43, %v1593_v52  ;;  %v1431_v47 = vadd.f32 %v3812_v54, %v1235_v61  ;;  %v4120_v61 = vld [vmem:[#allocation34_spill] sm:$0xff]  ;;  %v4121_v39 = vld [vmem:[#allocation41_spill] sm:$0xff] }
 0x2af   :  { %4118 = vst [vmem:[#allocation49_spill] sm:$0xff] %v3874_v31  ;;  %v3877_v42 = vpop.f32.mrf.mxu0  ;;  %v1435_v30 = vadd.f32 %v3828_v26, %v1239_v40  ;;  %v4127_v40 = vld [vmem:[#allocation31_spill] sm:$0xff] }
 0x2b0   :  { %v3879_v19 = vpop.f32.mrf.mxu1  ;;  %v1728_v37 = vadd.f32 %v1665_v51, %v1590_v56  ;;  %v1238_v51 = vadd.f32 %v3814_v29, %v3784_v4  ;;  %v1236_v56 = vadd.f32 %v3818_v11, %v3786_v60  ;;  %v1729_v14 = vadd.f32 %v1668_v36, %v1591_v59 }
 0x2b1   :  { %v3882_v2 = vpop.f32.mrf.mxu0  ;;  %v1597_v43 = vadd.f32 %v2862_v28, %v1431_v47  ;;  %v1429_v4 = vadd.f32 %v3816_v53, %v1233_v63  ;;  %v1732_v28 = vadd.f32 %v3850_v25, %v1594_v45  ;;  %v1242_v53 = vadd.f32 %v3830_v38, %v3792_v44  ;;  %v4119_v25 = vld [vmem:[#allocation30_spill] sm:$0xff] }
 0x2b2   :  { %v3884_v20 = vpop.f32.mrf.mxu1  ;;  %v1434_v60 = vadd.f32 %v3820_v13, %v1238_v51  ;;  %v1432_v29 = vadd.f32 %v3824_v16, %v1236_v56  ;;  %v4125_v63 = vld [vmem:[#allocation42_spill] sm:$0xff]  ;;  %v4126_v51 = vld [vmem:[#allocation45_spill] sm:$0xff] }
 0x2b3   :  { %v3887_v31 = vpop.f32.mrf.mxu0  ;;  %v1595_v13 = vadd.f32 %v3852_v24, %v1429_v4  ;;  %v1735_v16 = vadd.f32 %v3854_v23, %v1597_v43  ;;  %v1601_v56 = vadd.f32 %v4126_v51, %v1435_v30  ;;  %v4128_v43 = vld [vmem:[#allocation36_spill] sm:$0xff] }
 0x2b4   :  { %v3889_v48 = vpop.f32.mrf.mxu1  ;;  %v1600_v26 = vadd.f32 %v4121_v39, %v1434_v60 }
 0x2b5   :  { %v3897_v62 = vpop.f32.mrf.mxu0  ;;  %v1733_v47 = vadd.f32 %v4125_v63, %v1595_v13 }
 0x2b6   :  { %v2897_v34 = vpop.f32.mrf.mxu1 }
 0x2b7   :  { %v1908_v27 = vadd.f32 %v2897_v34, %v1730_v22  ;;  %v3900_v0 = vpop.f32.mrf.mxu0  ;;  %v1240_v34 = vadd.f32 %v4120_v61, %v4119_v25 }
 0x2b8   :  { %v1843_v1 = vpop.f32.mrf.mxu1 }
 0x2b9   :  { %v1906_v55 = vadd.f32 %v1843_v1, %v1728_v37  ;;  %v2917_v32 = vpop.f32.mrf.mxu0  ;;  %v4122_v37 = vld [vmem:[#allocation43_spill] sm:$0xff] }
 0x2ba   :  { %v2898_v35 = vpop.f32.mrf.mxu1  ;;  %v2046_v41 = vadd.f32 %v2917_v32, %v1908_v27  ;;  %v1598_v59 = vadd.f32 %v4122_v37, %v1432_v29  ;;  %v4130_v29 = vld [vmem:[#allocation37_spill] sm:$0xff] }
 0x2bb   :  { %v1909_v46 = vadd.f32 %v2898_v35, %v1731_v50  ;;  %v1981_v57 = vpop.f32.mrf.mxu0  ;;  %v1433_v50 = vadd.f32 %v4123_v21, %v1237_v49 }
 0x2bc   :  { %v1846_v18 = vpop.f32.mrf.mxu1  ;;  %v2044_v54 = vadd.f32 %v1981_v57, %v1906_v55  ;;  %v2066_v33 = vadd.f32 %v3905_v3, %v2046_v41  ;;  %v1438_v55 = vadd.f32 %v4124_v8, %v1242_v53  ;;  %v1243_v57 = vadd.f32 %v4128_v43, %v4127_v40  ;;  %v4134_v53 = vld [vmem:[#allocation47_spill] sm:$0xff] }
 0x2bd   :  { %v1907_v10 = vadd.f32 %v1846_v18, %v1729_v14  ;;  %v2918_v36 = vpop.f32.mrf.mxu0  ;;  %v4129_v18 = vld [vmem:[#allocation44_spill] sm:$0xff]  ;;  %v1599_v13 = vadd.f32 %v4134_v53, %v1433_v50 }
 0x2be   :  { %v2901_v11 = vpop.f32.mrf.mxu1  ;;  %v2047_v17 = vadd.f32 %v2918_v36, %v1909_v46  ;;  %v2064_v22 = vadd.f32 %v3905_v3, %v2044_v54  ;;  %v2082_v44 = vmax.f32 %v2066_v33, 0.0  ;;  %v1436_v33 = vadd.f32 %v4130_v29, %v1240_v34  ;;  %v4131_v36 = vld [vmem:[#allocation46_spill] sm:$0xff]  ;;  %v4136_v34 = vld [vmem:[#allocation39_spill] sm:$0xff] }
 0x2bf   :  { %v1912_v15 = vadd.f32 %v2901_v11, %v1734_v9  ;;  %v1984_v12 = vpop.f32.mrf.mxu0  ;;  %v1738_v9 = vadd.f32 %v4129_v18, %v1600_v26  ;;  %v1736_v11 = vadd.f32 %v4131_v36, %v1598_v59  ;;  %v1439_v39 = vadd.f32 %v4136_v34, %v1243_v57  ;;  %v4137_v26 = vld [vmem:[#allocation49_spill] sm:$0xff] }
 0x2c0   :  { %v1859_v7 = vpop.f32.mrf.mxu1  ;;  %v2067_v52 = vadd.f32 %v3905_v3, %v2047_v17  ;;  %v2045_v58 = vadd.f32 %v1984_v12, %v1907_v10  ;;  %v2080_v14 = vmax.f32 %v2064_v22, 0.0  ;;  %v4132_v17 = vld [vmem:[#allocation32_spill] sm:$0xff]  ;;  %v1604_v37 = vadd.f32 %v4137_v26, %v1438_v55 }
 0x2c1   :  { %v1910_v5 = vadd.f32 %v1859_v7, %v1732_v28  ;;  %v2921_v38 = vpop.f32.mrf.mxu0  ;;  %v1602_v59 = vadd.f32 %v3879_v19, %v1436_v33  ;;  %v1737_v21 = vadd.f32 %v3877_v42, %v1599_v13  ;;  %v1605_v50 = vadd.f32 %v3884_v20, %v1439_v39 }
 0x2c2   :  { %v2902_v24 = vpop.f32.mrf.mxu1  ;;  %v2083_v27 = vmax.f32 %v2067_v52, 0.0  ;;  %v2065_v23 = vadd.f32 %v3905_v3, %v2045_v58  ;;  %v2050_v1 = vadd.f32 %v2921_v38, %v1912_v15  ;;  %v4133_v15 = vld [vmem:[#allocation38_spill] sm:$0xff] }
 0x2c3   :  { %v1913_v6 = vadd.f32 %v2902_v24, %v1735_v16  ;;  %v1997_v32 = vpop.f32.mrf.mxu0  ;;  %v1241_v30 = vadd.f32 %v4133_v15, %v4132_v17  ;;  %v4135_v16 = vld [vmem:[#allocation48_spill] sm:$0xff]  ;;  %v1740_v40 = vadd.f32 %v3887_v31, %v1602_v59  ;;  %v1743_v57 = vadd.f32 %v3897_v62, %v1605_v50 }
 0x2c4   :  { %v1862_v35 = vpop.f32.mrf.mxu1  ;;  %v2097_v45 = vpack.c.bf16 %v2083_v27, %v2082_v44  ;;  %v2081_v41 = vmax.f32 %v2065_v23, 0.0  ;;  %v2048_v46 = vadd.f32 %v1997_v32, %v1910_v5  ;;  %v2070_v54 = vadd.f32 %v3905_v3, %v2050_v1 }
 0x2c5   :  { %v1911_v10 = vadd.f32 %v1862_v35, %v1733_v47  ;;  %v2922_v4 = vpop.f32.mrf.mxu0  ;;  %v1739_v12 = vadd.f32 %v4135_v16, %v1601_v56  ;;  %v4138_v56 = vld [vmem:[#allocation40_spill] sm:$0xff]  ;;  %v1742_v35 = vadd.f32 %v3882_v2, %v1604_v37 }
 0x2c6   :  { %v2905_v60 = vpop.f32.mrf.mxu1  ;;  %v2096_v49 = vpack.c.bf16 %v2081_v41, %v2080_v14  ;;  %v2051_v28 = vadd.f32 %v2922_v4, %v1913_v6  ;;  %v2068_v58 = vadd.f32 %v3905_v3, %v2048_v46  ;;  %v2086_v44 = vmax.f32 %v2070_v54, 0.0 }
 0x2c7   :  { %v1916_v7 = vadd.f32 %v2905_v60, %v1738_v9  ;;  %v2000_v22 = vpop.f32.mrf.mxu0  ;;  %v1437_v32 = vadd.f32 %v4138_v56, %v1241_v30 }
 0x2c8   :  { %v1875_v52 = vpop.f32.mrf.mxu1  ;;  %v2071_v5 = vadd.f32 %v3905_v3, %v2051_v28  ;;  %v2049_v25 = vadd.f32 %v2000_v22, %v1911_v10  ;;  %2935 = vmatprep.mubr.msk.bf16.mxu1 %vm597_vm1, %v2096_v49  ;;  %v2084_v47 = vmax.f32 %v2068_v58, 0.0 }
 0x2c9   :  { %v1914_v61 = vadd.f32 %v1875_v52, %v1736_v11  ;;  %v2925_v38 = vpop.f32.mrf.mxu0  ;;  %2936 = vmatmul.mubr.msk.bf16.vlgmr.msra.gmra.mxu1 %vm597_vm1, %v2097_v45  ;;  %v1603_v20 = vadd.f32 %v3889_v48, %v1437_v32 }
 0x2ca   :  { %v2906_v24 = vpop.f32.mrf.mxu1  ;;  %v2087_v27 = vmax.f32 %v2071_v5, 0.0  ;;  %v2069_v23 = vadd.f32 %v3905_v3, %v2049_v25  ;;  %v2054_v1 = vadd.f32 %v2925_v38, %v1916_v7  ;;  %v2274_v38 = vpop.permute.xlu1 %2273 }
 0x2cb   :  { %v1917_v6 = vadd.f32 %v2906_v24, %v1739_v12  ;;  %v2013_v8 = vpop.f32.mrf.mxu0  ;;  %v1741_v49 = vadd.f32 %v3900_v0, %v1603_v20  ;;  %v2276_v24 = vpop.permute.xlu0 %2275 }
 0x2cc   :  { %v1878_v63 = vpop.f32.mrf.mxu1  ;;  %v2099_v55 = vpack.c.bf16 %v2087_v27, %v2086_v44  ;;  %v2085_v51 = vmax.f32 %v2069_v23, 0.0  ;;  %v2052_v19 = vadd.f32 %v2013_v8, %v1914_v61  ;;  %v2074_v14 = vadd.f32 %v3905_v3, %v2054_v1  ;;  %v4139_v8 = vld [vmem:[#allocation14_spill] sm:$0xff] }
 0x2cd   :  { %v1915_v45 = vadd.f32 %v1878_v63, %v1737_v21  ;;  %v2926_v41 = vpop.f32.mrf.mxu0 }
 0x2ce   :  { %v2909_v46 = vpop.f32.mrf.mxu1  ;;  %v2098_v42 = vpack.c.bf16 %v2085_v51, %v2084_v47  ;;  %v2055_v43 = vadd.f32 %v2926_v41, %v1917_v6  ;;  %v2072_v10 = vadd.f32 %v3905_v3, %v2052_v19  ;;  %v2090_v29 = vmax.f32 %v2074_v14, 0.0  ;;  %v2278_v27 = vpop.permute.xlu1 %2277 }
 0x2cf   :  { %v1920_v18 = vadd.f32 %v2909_v46, %v1742_v35  ;;  %v2016_v9 = vpop.f32.mrf.mxu0  ;;  %v2280_v23 = vpop.permute.xlu0 %2279  ;;  %v4141_v35 = vld [vmem:[#allocation16_spill] sm:$0xff] }
 0x2d0   :  { %v1891_v54 = vpop.f32.mrf.mxu1  ;;  %v2075_v2 = vadd.f32 %v3905_v3, %v2055_v43  ;;  %v2053_v4 = vadd.f32 %v2016_v9, %v1915_v45  ;;  %2939 = vmatprep.mubr.msk.bf16.mxu1 %vm597_vm1, %v2098_v42  ;;  %v2088_v15 = vmax.f32 %v2072_v10, 0.0 }
 0x2d1   :  { %v1918_v60 = vadd.f32 %v1891_v54, %v1740_v40  ;;  %v2929_v33 = vpop.f32.mrf.mxu0  ;;  %2940 = vmatmul.mubr.msk.bf16.gmra.mxu1 %vm597_vm1, %v2099_v55  ;;  %v4140_v55 = vld [vmem:[#allocation15_spill] sm:$0xff]  ;;  %v4142_v40 = vld [vmem:[#allocation17_spill] sm:$0xff] }
 0x2d2   :  { %v2910_v31 = vpop.f32.mrf.mxu1  ;;  %v2091_v36 = vmax.f32 %v2075_v2, 0.0  ;;  %v2073_v48 = vadd.f32 %v3905_v3, %v2053_v4  ;;  %v2058_v62 = vadd.f32 %v2929_v33, %v1920_v18  ;;  %v2282_v1 = vpop.permute.xlu1 %2281  ;;  %v4144_v2 = vld [vmem:[#allocation19_spill] sm:$0xff] }
 0x2d3   :  { %v1921_v11 = vadd.f32 %v2910_v31, %v1743_v57  ;;  %v2029_v28 = vpop.f32.mrf.mxu0  ;;  %v2284_v6 = vpop.permute.xlu0 %2283  ;;  %v4143_v57 = vld [vmem:[#allocation18_spill] sm:$0xff]  ;;  %v4145_v31 = vld [vmem:[#allocation20_spill] sm:$0xff] }
 0x2d4   :  { %v1894_v17 = vpop.f32.mrf.mxu1  ;;  %v2101_v30 = vpack.c.bf16 %v2091_v36, %v2090_v29  ;;  %v2089_v53 = vmax.f32 %v2073_v48, 0.0  ;;  %v2056_v13 = vadd.f32 %v2029_v28, %v1918_v60  ;;  %v2078_v22 = vadd.f32 %v3905_v3, %v2058_v62 }
 0x2d5   :  { %v1919_v16 = vadd.f32 %v1894_v17, %v1741_v49  ;;  %v2930_v12 = vpop.f32.mrf.mxu0 }
 0x2d6   :  { %v2100_v7 = vpack.c.bf16 %v2089_v53, %v2088_v15  ;;  %v2059_v52 = vadd.f32 %v2930_v12, %v1921_v11  ;;  %v2076_v5 = vadd.f32 %v3905_v3, %v2056_v13  ;;  %v2094_v0 = vmax.f32 %v2078_v22, 0.0  ;;  %v2286_v21 = vpop.permute.xlu1 %2285  ;;  %v4146_v11 = vld [vmem:[#allocation21_spill] sm:$0xff] }
 0x2d7   :  { %v2032_v58 = vpop.f32.mrf.mxu0  ;;  %v2288_v56 = vpop.permute.xlu0 %2287 }
 0x2d8   :  { %v2079_v25 = vadd.f32 %v3905_v3, %v2059_v52  ;;  %v2057_v61 = vadd.f32 %v2032_v58, %v1919_v16  ;;  %2943 = vmatprep.mubr.msk.bf16.mxu1 %vm597_vm1, %v2100_v7  ;;  %v2092_v26 = vmax.f32 %v2076_v5, 0.0  ;;  %v4148_v7 = vld [vmem:[#allocation23_spill] sm:$0xff]  ;;  %v4149_v5 = vld [vmem:[#allocation24_spill] sm:$0xff] }
 0x2d9   :  { %2944 = vmatmul.mubr.msk.bf16.gmra.mxu1 %vm597_vm1, %v2101_v30  ;;  %v4147_v30 = vld [vmem:[#allocation22_spill] sm:$0xff] }
 0x2da   :  { %v2095_v34 = vmax.f32 %v2079_v25, 0.0  ;;  %v2077_v39 = vadd.f32 %v3905_v3, %v2057_v61  ;;  %v2290_v41 = vpop.permute.xlu1 %2289 }
 0x2db   :  { %v2292_v54 = vpop.permute.xlu0 %2291 }
 0x2dc   :  { %v2103_v37 = vpack.c.bf16 %v2095_v34, %v2094_v0  ;;  %v2093_v59 = vmax.f32 %v2077_v39, 0.0  ;;  %v4150_v39 = vld [vmem:[#allocation25_spill] sm:$0xff] }
 0x2de   :  { %v2102_v44 = vpack.c.bf16 %v2093_v59, %v2092_v26  ;;  %v2294_v29 = vpop.permute.xlu1 %2293 }
 0x2df   :  { %v2296_v17 = vpop.permute.xlu0 %2295 }
 0x2e0   :  { %2947 = vmatprep.mubr.msk.bf16.mxu1 %vm597_vm1, %v2102_v44 }
 0x2e1   :  { %2948 = vmatmul.mubr.msk.bf16.gmra.mxu1 %vm597_vm1, %v2103_v37 }
 0x2e2   :  { %v2298_v16 = vpop.permute.xlu1 %2297 }
 0x2e3   :  { %v2300_v0 = vpop.permute.xlu0 %2299 }
 0x2e6   :  { %v2302_v59 = vpop.permute.xlu1 %2301 }
 0x389   :  { %v2937_v50 = vpop.f32.mrf.mxu1 }
 0x38a   :  { %v2243_v3 = vadd.f32 %v2937_v50, %v4139_v8  ;;  %v2324_v63 = vsel %vm2321_vm4, %v2278_v27, %v2937_v50  ;;  %v2304_v50 = vpop.permute.xlu0 %2303 }
 0x38b   :  { %2357 = vst.msk [vmem:[#allocation8 + $0x10] sm:$0xff] %vm2354_vm5, %v2324_v63  ;;  %v2178_v47 = vpop.f32.mrf.mxu1 }
 0x38c   :  { %2340 = vst.msk [vmem:[#allocation7 + $0x10] sm:$0xff] %vm2321_vm4, %v2243_v3  ;;  %v2241_v51 = vadd.f32 %v2178_v47, %v4140_v55  ;;  %v2322_v19 = vsel %vm2321_vm4, %v2274_v38, %v2178_v47  ;;  %v4151_v38 = vld [vmem:[#allocation26_spill] sm:$0xff]  ;;  %v4153_v3 = vld [vmem:[#allocation28_spill] sm:$0xff] }
 0x38d   :  { %2355 = vst.msk [vmem:[#allocation8] sm:$0xff] %vm2354_vm5, %v2322_v19  ;;  %v2938_v32 = vpop.f32.mrf.mxu1 }
 0x38e   :  { %2338 = vst.msk [vmem:[#allocation7] sm:$0xff] %vm2321_vm4, %v2241_v51  ;;  %v2244_v14 = vadd.f32 %v2938_v32, %v4141_v35  ;;  %v2325_v45 = vsel %vm2321_vm4, %v2280_v23, %v2938_v32  ;;  %v4154_v51 = vld [vmem:[#allocation29_spill] sm:$0xff] }
 0x38f   :  { %2358 = vst.msk [vmem:[#allocation8 + $0x18] sm:$0xff] %vm2354_vm5, %v2325_v45  ;;  %v2181_v46 = vpop.f32.mrf.mxu1 }
 0x390   :  { %2341 = vst.msk [vmem:[#allocation7 + $0x18] sm:$0xff] %vm2321_vm4, %v2244_v14  ;;  %v2242_v42 = vadd.f32 %v2181_v46, %v4142_v40  ;;  %v2323_v43 = vsel %vm2321_vm4, %v2276_v24, %v2181_v46 }
 0x391   :  { %2356 = vst.msk [vmem:[#allocation8 + $0x8] sm:$0xff] %vm2354_vm5, %v2323_v43  ;;  %v2941_v20 = vpop.f32.mrf.mxu1 }
 0x392   :  { %2339 = vst.msk [vmem:[#allocation7 + $0x8] sm:$0xff] %vm2321_vm4, %v2242_v42  ;;  %v2247_v18 = vadd.f32 %v2941_v20, %v4143_v57  ;;  %v2328_v9 = vsel %vm2321_vm4, %v2286_v21, %v2941_v20 }
 0x393   :  { %2361 = vst.msk [vmem:[#allocation8 + $0x30] sm:$0xff] %vm2354_vm5, %v2328_v9  ;;  %v2194_v10 = vpop.f32.mrf.mxu1 }
 0x394   :  { %2344 = vst.msk [vmem:[#allocation7 + $0x30] sm:$0xff] %vm2321_vm4, %v2247_v18  ;;  %v2245_v4 = vadd.f32 %v2194_v10, %v4144_v2  ;;  %v2326_v60 = vsel %vm2321_vm4, %v2282_v1, %v2194_v10  ;;  %v4152_v1 = vld [vmem:[#allocation27_spill] sm:$0xff] }
 0x395   :  { %2359 = vst.msk [vmem:[#allocation8 + $0x20] sm:$0xff] %vm2354_vm5, %v2326_v60  ;;  %v2942_v33 = vpop.f32.mrf.mxu1 }
 0x396   :  { %2342 = vst.msk [vmem:[#allocation7 + $0x20] sm:$0xff] %vm2321_vm4, %v2245_v4  ;;  %v2248_v36 = vadd.f32 %v2942_v33, %v4145_v31  ;;  %v2329_v48 = vsel %vm2321_vm4, %v2288_v56, %v2942_v33 }
 0x397   :  { %2362 = vst.msk [vmem:[#allocation8 + $0x38] sm:$0xff] %vm2354_vm5, %v2329_v48  ;;  %v2197_v62 = vpop.f32.mrf.mxu1 }
 0x398   :  { %2345 = vst.msk [vmem:[#allocation7 + $0x38] sm:$0xff] %vm2321_vm4, %v2248_v36  ;;  %v2246_v49 = vadd.f32 %v2197_v62, %v4146_v11  ;;  %v2327_v28 = vsel %vm2321_vm4, %v2284_v6, %v2197_v62 }
 0x399   :  { %2360 = vst.msk [vmem:[#allocation8 + $0x28] sm:$0xff] %vm2354_vm5, %v2327_v28  ;;  %v2945_v15 = vpop.f32.mrf.mxu1 }
 0x39a   :  { %2343 = vst.msk [vmem:[#allocation7 + $0x28] sm:$0xff] %vm2321_vm4, %v2246_v49  ;;  %v2251_v53 = vadd.f32 %v2945_v15, %v4147_v30  ;;  %v2332_v13 = vsel %vm2321_vm4, %v2294_v29, %v2945_v15 }
 0x39b   :  { %2365 = vst.msk [vmem:[#allocation8 + $0x50] sm:$0xff] %vm2354_vm5, %v2332_v13  ;;  %v2210_v12 = vpop.f32.mrf.mxu1 }
 0x39c   :  { %2348 = vst.msk [vmem:[#allocation7 + $0x50] sm:$0xff] %vm2321_vm4, %v2251_v53  ;;  %v2249_v22 = vadd.f32 %v2210_v12, %v4148_v7  ;;  %v2330_v52 = vsel %vm2321_vm4, %v2290_v41, %v2210_v12 }
 0x39d   :  { %2363 = vst.msk [vmem:[#allocation8 + $0x40] sm:$0xff] %vm2354_vm5, %v2330_v52  ;;  %v2946_v58 = vpop.f32.mrf.mxu1 }
 0x39e   :  { %2346 = vst.msk [vmem:[#allocation7 + $0x40] sm:$0xff] %vm2321_vm4, %v2249_v22  ;;  %v2252_v25 = vadd.f32 %v2946_v58, %v4149_v5  ;;  %v2333_v61 = vsel %vm2321_vm4, %v2296_v17, %v2946_v58 }
 0x39f   :  { %2366 = vst.msk [vmem:[#allocation8 + $0x58] sm:$0xff] %vm2354_vm5, %v2333_v61  ;;  %v2213_v34 = vpop.f32.mrf.mxu1 }
 0x3a0   :  { %2349 = vst.msk [vmem:[#allocation7 + $0x58] sm:$0xff] %vm2321_vm4, %v2252_v25  ;;  %v2250_v26 = vadd.f32 %v2213_v34, %v4150_v39  ;;  %v2331_v37 = vsel %vm2321_vm4, %v2292_v54, %v2213_v34 }
 0x3a1   :  { %2364 = vst.msk [vmem:[#allocation8 + $0x48] sm:$0xff] %vm2354_vm5, %v2331_v37  ;;  %v2949_v44 = vpop.f32.mrf.mxu1 }
 0x3a2   :  { %2347 = vst.msk [vmem:[#allocation7 + $0x48] sm:$0xff] %vm2321_vm4, %v2250_v26  ;;  %v2255_v24 = vadd.f32 %v2949_v44, %v4151_v38  ;;  %v2336_v27 = vsel %vm2321_vm4, %v2302_v59, %v2949_v44 }
 0x3a3   :  { %2369 = vst.msk [vmem:[#allocation8 + $0x70] sm:$0xff] %vm2354_vm5, %v2336_v27  ;;  %v2226_v23 = vpop.f32.mrf.mxu1 }
 0x3a4   :  { %2352 = vst.msk [vmem:[#allocation7 + $0x70] sm:$0xff] %vm2321_vm4, %v2255_v24  ;;  %v2253_v6 = vadd.f32 %v2226_v23, %v4152_v1  ;;  %v2334_v21 = vsel %vm2321_vm4, %v2298_v16, %v2226_v23 }
 0x3a5   :  { %2367 = vst.msk [vmem:[#allocation8 + $0x60] sm:$0xff] %vm2354_vm5, %v2334_v21  ;;  %v2950_v8 = vpop.f32.mrf.mxu1 }
 0x3a6   :  { %2350 = vst.msk [vmem:[#allocation7 + $0x60] sm:$0xff] %vm2321_vm4, %v2253_v6  ;;  %v2256_v63 = vadd.f32 %v2950_v8, %v4153_v3  ;;  %v2337_v47 = vsel %vm2321_vm4, %v2304_v50, %v2950_v8 }
 0x3a7   :  { %2370 = vst.msk [vmem:[#allocation8 + $0x78] sm:$0xff] %vm2354_vm5, %v2337_v47  ;;  %v2229_v55 = vpop.f32.mrf.mxu1 }
 0x3a8   :  { %2353 = vst.msk [vmem:[#allocation7 + $0x78] sm:$0xff] %vm2321_vm4, %v2256_v63  ;;  %v2254_v19 = vadd.f32 %v2229_v55, %v4154_v51  ;;  %v2335_v56 = vsel %vm2321_vm4, %v2300_v0, %v2229_v55 }
 0x3a9   :  { %2368 = vst.msk [vmem:[#allocation8 + $0x68] sm:$0xff] %vm2354_vm5, %v2335_v56 }
 0x3aa   :  { %2351 = vst.msk [vmem:[#allocation7 + $0x68] sm:$0xff] %vm2321_vm4, %v2254_v19 }
 0x3ab   :  { %3072 = shalt.err (!%p3069_p0)
}
 0x3ac   :  { %2394 = dma.vmem_to_hbm [thread:$0]  %s2389_s26, 2048, %s4063_s6, [#allocation9], %s3110_s24, %s3110_s24, %s3111_s25  }
 0x3ad   :  { %s3081_s8 = scalar_lea.vmem %s2377_s28, 2048  ;;  %p3086_p2 = scmp.lt.s32.totalorder %s2377_s28, %s2377_s28 }
 0x3ae   :  { %p3082_p1 = scmp.ne.s32.totalorder %s2377_s28, %s3081_s8  ;;  %p3087_p3 = scmp.lt.s32.totalorder %s3081_s8, %s3081_s8 }
 0x3b0   :  { %p3088_p4 = por %p3087_p3, %p3086_p2 }
 0x3b2   :  { %p3089_p5 = pnand %p3088_p4, %p3082_p1 }
 0x3b4   :  { %3092 = shalt.err (!%p3089_p5)
}
 0x3b5   :  { %2382 = dma.vmem_to_hbm [thread:$0]  %s2377_s28, 2048, %s4062_s5, [#allocation4], %s3110_s24, %s3110_s24, %s3111_s25  }
 0x3b6   :  { %3105 = dma.done.wait [#allocation4], 2048  }
 0x3b7   :  { %3106 = vsyncadd [#allocation4], 4294965248 }
 0x3b8   :  { %3107 = dma.done.wait [#allocation9], 2048  }
 0x3b9   :  { %3108 = vsyncadd [#allocation9], 4294965248 }
 0x3ba   :  { %2401 = vsyncpa [#allocation3], 1 }
 0x3bb   :  { %2402 = vsyncpa [#allocation6], 1 }
 0x3bc   :  { %2403 = vsyncpa [#allocation4], 1 }
 0x3bd   :  { %2404 = vsyncpa [#allocation9], 1 }

</bundles_post_ra>
